<compile_context>
chip_gen: v5e
topology: v5e:2x2
jax: 0.10.0
libtpu: 0.0.40
codegen_flags: <defaults>
</compile_context>

<pallas_src>
import jax
import jax.numpy as jnp
from jax.experimental import pallas as pl
from jax.experimental.pallas import tpu as pltpu

KERNEL_SET = (2, 4, 6, 8)
MAX_K = max(KERNEL_SET)


def _dilated_inception_kernel(x_ref, w_ref, b_ref, o_ref):
    # x_ref: (tb, tn, T*cin)        bf16  lane-dense channels-last activations
    # w_ref: (T*cin, t_out*cout)    bf16  band-structured combined weights
    # b_ref: (1, t_out*cout)        f32   bias tiled over time
    # o_ref: (tb, tn, t_out*cout)   f32   lane-dense output slab
    acc = jax.lax.dot_general(
        x_ref[...], w_ref[...],
        dimension_numbers=(((2,), (0,)), ((), ())),
        preferred_element_type=jnp.float32,
    )                                                   # (tb, tn, t_out*cout) f32
    o_ref[...] = (acc + b_ref[...]).astype(o_ref.dtype)  # bias add stays f32 (v5e-safe)


def _choose_tiles(batch, n_nodes, row_bytes, target_block_bytes=2 << 20):
    """Pick (tb, tn): tn divides N (multiple of 8 unless full extent), tb divides B,
    aiming for roughly target_block_bytes of traffic per grid step."""
    if n_nodes <= 256:
        tn = n_nodes                         # full extent: always a legal block dim
    else:
        tn = n_nodes                         # fallback: full extent is legal
        for cand in range(8, 257, 8):        # largest /8 divisor of N up to 256
            if n_nodes % cand == 0:
                tn = cand
    tb = 1
    for cand in range(2, min(batch, 8) + 1):
        if batch % cand == 0 and cand * tn * row_bytes <= target_block_bytes:
            tb = cand
    return tb, tn


def dilated_inception_pallas(x_nchw, weights, biases, dilation=2):
    """x_nchw: (B, cin, N, T) f32. weights[i]: (cout_per, cin, 1, k_i). biases[i]: (cout_per,)."""
    B, cin, N, T = x_nchw.shape
    cout_per = weights[0].shape[0]
    cout = cout_per * len(KERNEL_SET)
    t_out = T - dilation * (MAX_K - 1)
    assert t_out > 0, "sequence too short for this dilation / kernel set"

    # ---- combined per-tap weights W_taps[m, cin, cout]; branch k owns taps m = 8-k .. 7.
    w_taps = jnp.zeros((MAX_K, cin, cout), jnp.float32)
    for idx, k in enumerate(KERNEL_SET):
        wk = weights[idx].astype(jnp.float32)[:, :, 0, :]            # (cout_per, cin, k)
        w_taps = w_taps.at[MAX_K - k:, :, idx * cout_per:(idx + 1) * cout_per].set(
            jnp.transpose(wk, (2, 1, 0)))                            # (k, cin, cout_per)

    # ---- band-structured dense weight: W2[(tau,c),(t,o)] = W_taps[(tau-t)/d, c, o], else 0.
    taps = jnp.arange(t_out)[None, :] + dilation * jnp.arange(MAX_K)[:, None]      # (8, t_out)
    sel = (jnp.arange(T)[None, :, None] == taps[:, None, :]).astype(jnp.float32)   # (8, T, t_out)
    w2 = jnp.einsum("mst,mco->scto", sel, w_taps)                    # (T, cin, t_out, cout)
    w2 = w2.reshape(T * cin, t_out * cout).astype(jnp.bfloat16)

    bias_flat = jnp.tile(jnp.concatenate(biases).astype(jnp.float32), t_out)
    bias_flat = bias_flat.reshape(1, t_out * cout)

    # ---- activations: NCHW -> channels-last, flattened to a lane-dense T*cin axis, bf16.
    #      (bf16 cast fuses into the transpose; the trailing reshape is free.)
    x_flat = jnp.transpose(x_nchw, (0, 2, 3, 1)).astype(jnp.bfloat16).reshape(B, N, T * cin)

    row_bytes = T * cin * 2 + t_out * cout * 4          # bf16 in + f32 out per (b, n) row
    tb, tn = _choose_tiles(B, N, row_bytes)
    grid = (B // tb, N // tn)

    # VMEM budget: double-buffered in/out blocks + resident weights/bias (+ slack),
    # capped at v7x's 64 MiB physical VMEM.
    block_bytes = tb * tn * row_bytes
    const_bytes = (T * cin) * (t_out * cout) * 2 + t_out * cout * 4
    vmem_limit = int(max(32 * 2**20,
                         min(64 * 2**20, 2 * block_bytes + const_bytes + (4 << 20))))

    out_flat = pl.pallas_call(
        _dilated_inception_kernel,
        out_shape=jax.ShapeDtypeStruct((B, N, t_out * cout), jnp.float32),
        grid_spec=pltpu.PrefetchScalarGridSpec(
            num_scalar_prefetch=0,
            grid=grid,
            in_specs=[
                pl.BlockSpec((tb, tn, T * cin), lambda b, n: (b, n, 0)),
                pl.BlockSpec((T * cin, t_out * cout), lambda b, n: (0, 0)),
                pl.BlockSpec((1, t_out * cout), lambda b, n: (0, 0)),
            ],
            out_specs=pl.BlockSpec((tb, tn, t_out * cout), lambda b, n: (b, n, 0)),
        ),
        compiler_params=pltpu.CompilerParams(
            dimension_semantics=("parallel", "parallel"),
            vmem_limit_bytes=vmem_limit,
        ),
    )(x_flat, w2, bias_flat)

    # Free reshape (splits the trailing contiguous dim), then one transpose to NCHW.
    return jnp.transpose(out_flat.reshape(B, N, t_out, cout), (0, 3, 1, 2))


def dilated_inception_reference(x_nchw, weights, biases, dilation=2):
    """Pure-JAX reference mirroring the PyTorch forward (per-branch dilated convs)."""
    outs = []
    for idx, _ in enumerate(KERNEL_SET):
        y = jax.lax.conv_general_dilated(
            x_nchw, weights[idx],
            window_strides=(1, 1), padding="VALID",
            rhs_dilation=(1, dilation),
            dimension_numbers=("NCHW", "OIHW", "NCHW"),
            precision=jax.lax.Precision.HIGHEST,
        )
        y = y + biases[idx][None, :, None, None]
        outs.append(y)
    t_last = outs[-1].shape[3]
    outs = [y[..., -t_last:] for y in outs]
    return jnp.concatenate(outs, axis=1)


if __name__ == "__main__":
    B, cin, cout, N, T = 2, 32, 32, 8, 32
    dilation = 2
    cout_per = cout // len(KERNEL_SET)

    key = jax.random.PRNGKey(0)
    keys = jax.random.split(key, 2 * len(KERNEL_SET) + 1)
    x = jax.random.normal(keys[0], (B, cin, N, T), dtype=jnp.float32)

    weights, biases = [], []
    for i, k in enumerate(KERNEL_SET):
        w = 0.1 * jax.random.normal(keys[1 + 2 * i], (cout_per, cin, 1, k), dtype=jnp.float32)
        b = 0.1 * jax.random.normal(keys[2 + 2 * i], (cout_per,), dtype=jnp.float32)
        weights.append(w)
        biases.append(b)

    out = jax.block_until_ready(dilated_inception_pallas(x, weights, biases, dilation=dilation))

    # Reference computed on bf16-rounded operands (the kernel feeds bf16 into the MXU
    # and accumulates in f32), so the comparison isolates kernel bugs from quantization.
    x_q = x.astype(jnp.bfloat16).astype(jnp.float32)
    w_q = [w.astype(jnp.bfloat16).astype(jnp.float32) for w in weights]
    ref = dilated_inception_reference(x_q, w_q, biases, dilation=dilation)

    assert out.shape == ref.shape, (out.shape, ref.shape)
    max_err = float(jnp.max(jnp.abs(out - ref)))
    assert jnp.allclose(out, ref, rtol=1e-2, atol=1e-2), max_err

    print("KERNEL_OK")
</pallas_src>

<mosaic_0001>
module attributes {stable_mosaic.version = 11 : i64} {
  func.func @_dilated_inception_kernel(%arg0: i32, %arg1: i32, %arg2: memref<2x8x1024xbf16, #tpu.memory_space<vmem>>, %arg3: memref<1024x576xbf16, #tpu.memory_space<vmem>>, %arg4: memref<1x576xf32, #tpu.memory_space<vmem>>, %arg5: memref<2x8x576xf32, #tpu.memory_space<vmem>>) attributes {dimension_semantics = [#tpu.dimension_semantics<parallel>, #tpu.dimension_semantics<parallel>], iteration_bounds = array<i64: 1, 1>, scalar_prefetch = 0 : i64, scratch_operands = 0 : i64, tpu.core_type = #tpu.core_type<tc>, window_params = [{transform_indices = @transform_0, window_bounds = array<i64: 2, 8, 1024>}, {pipeline_mode = #tpu.pipeline_mode<synchronous>, transform_indices = @transform_1, window_bounds = array<i64: 1024, 576>}, {pipeline_mode = #tpu.pipeline_mode<synchronous>, transform_indices = @transform_2, window_bounds = array<i64: 1, 576>}, {transform_indices = @transform_3, window_bounds = array<i64: 2, 8, 576>}]} {
    %c0 = arith.constant 0 : index
    %c0_0 = arith.constant 0 : index
    %c0_1 = arith.constant 0 : index
    %0 = vector.load %arg2[%c0, %c0_0, %c0_1] : memref<2x8x1024xbf16, #tpu.memory_space<vmem>>, vector<2x8x1024xbf16>
    %c0_2 = arith.constant 0 : index
    %c0_3 = arith.constant 0 : index
    %1 = vector.load %arg3[%c0_2, %c0_3] : memref<1024x576xbf16, #tpu.memory_space<vmem>>, vector<1024x576xbf16>
    %cst = arith.constant dense<0.000000e+00> : vector<2x8x576xf32>
    %2 = tpu.matmul %0, %1, %cst {dimension_numbers = #tpu.dot_dimension_numbers<[2], [0], [0, 1], [1], [0, 0, 0, 1, 1, 1], [], []>} : vector<2x8x1024xbf16>, vector<1024x576xbf16>, vector<2x8x576xf32> -> vector<2x8x576xf32>
    %c0_4 = arith.constant 0 : index
    %c0_5 = arith.constant 0 : index
    %3 = vector.load %arg4[%c0_4, %c0_5] : memref<1x576xf32, #tpu.memory_space<vmem>>, vector<1x576xf32>
    %4 = vector.shape_cast %3 : vector<1x576xf32> to vector<1x1x576xf32>
    %5 = vector.broadcast %4 : vector<1x1x576xf32> to vector<2x8x576xf32>
    %6 = arith.addf %2, %5 : vector<2x8x576xf32>
    %c0_6 = arith.constant 0 : index
    %c0_7 = arith.constant 0 : index
    %c0_8 = arith.constant 0 : index
    %7 = vector.load %arg5[%c0_6, %c0_7, %c0_8] : memref<2x8x576xf32, #tpu.memory_space<vmem>>, vector<2x8x576xf32>
    tpu.vector_store %arg5[%c0_6, %c0_7, %c0_8], %6 {strides = array<i32>} : memref<2x8x576xf32, #tpu.memory_space<vmem>>, vector<2x8x576xf32>,
    return
  }
  func.func @transform_0(%arg0: i32, %arg1: i32) -> (i32, i32, i32) {
    %c0_i32 = arith.constant 0 : i32
    %c0_i32_0 = arith.constant 0 : i32
    return %arg0, %arg1, %c0_i32 : i32, i32, i32
  }
  func.func @transform_1(%arg0: i32, %arg1: i32) -> (i32, i32) {
    %c0_i32 = arith.constant 0 : i32
    %c0_i32_0 = arith.constant 0 : i32
    %c0_i32_1 = arith.constant 0 : i32
    return %c0_i32, %c0_i32_0 : i32, i32
  }
  func.func @transform_2(%arg0: i32, %arg1: i32) -> (i32, i32) {
    %c0_i32 = arith.constant 0 : i32
    %c0_i32_0 = arith.constant 0 : i32
    %c0_i32_1 = arith.constant 0 : i32
    return %c0_i32, %c0_i32_0 : i32, i32
  }
  func.func @transform_3(%arg0: i32, %arg1: i32) -> (i32, i32, i32) {
    %c0_i32 = arith.constant 0 : i32
    %c0_i32_0 = arith.constant 0 : i32
    return %arg0, %arg1, %c0_i32 : i32, i32, i32
  }
}

</mosaic_0001>

<bundles_post_ra>
// kernel: tpu_custom_call.1
= control target key start
LH: loop header
LB: loop body
LE: loop exit
PB: predicated region body
PF: predicated region fallthrough
CT: control target
= control target key end

     0   :  { %s6455_s0 = inlined_call_operand.vmem [shape: bf16[2,8,1024], index: 0, kind: input, shape index: {}]   ;;  %s6456_s1 = inlined_call_operand.vmem [shape: bf16[1024,576], index: 1, kind: input, shape index: {}]   ;;  %s6457_s2 = inlined_call_operand.vmem [shape: f32[1,576], index: 2, kind: input, shape index: {}]   ;;  %s6458_s3 = inlined_call_operand.hbm [shape: f32[2,8,576], index: 3, kind: output, shape index: {}]  }
   0x1   :  { %v2886_v0 = vld [vmem:[%s6456_s1 + $0x118] sm:$0xf]  ;;  %v4069_v1 = vld [vmem:[%s6456_s1 + $0x128] sm:$0xf0]  ;;  %v2866_v11 = vld [vmem:[%s6456_s1 + $0xf0] sm:$0xf] }
   0x2   :  { %v3046_v2 = vld [vmem:[%s6456_s1 + $0x258] sm:$0xf]  ;;  %v2887_v3 = vor.u32 %v4069_v1, %v2886_v0  ;;  %v4109_v4 = vld [vmem:[%s6456_s1 + $0x268] sm:$0xf0]  ;;  %v4064_v13 = vld [vmem:[%s6456_s1 + $0x100] sm:$0xf0] }
   0x3   :  { %v3206_v5 = vld [vmem:[%s6456_s1 + $0x398] sm:$0xf]  ;;  %v4149_v6 = vld [vmem:[%s6456_s1 + $0x3a8] sm:$0xf0]  ;;  %v3047_v7 = vor.u32 %v4109_v4, %v3046_v2  ;;  %v3026_v14 = vld [vmem:[%s6456_s1 + $0x230] sm:$0xf]  ;;  %v2867_v16 = vor.u32 %v4064_v13, %v2866_v11 }
   0x4   :  { %v3207_v8 = vor.u32 %v4149_v6, %v3206_v5  ;;  %v3366_v9 = vld [vmem:[%s6456_s1 + $0x4d8] sm:$0xf]  ;;  %v4189_v10 = vld [vmem:[%s6456_s1 + $0x4e8] sm:$0xf0]  ;;  %2123 = vmatpush.bf16.msra.mxu0 %v2887_v3  ;;  %v4104_v15 = vld [vmem:[%s6456_s1 + $0x240] sm:$0xf0] }
   0x5   :  { %v3367_v12 = vor.u32 %v4189_v10, %v3366_v9  ;;  %2137 = vmatpush.bf16.msra.mxu1 %v3047_v7  ;;  %v3027_v17 = vor.u32 %v4104_v15, %v3026_v14  ;;  %v3186_v18 = vld [vmem:[%s6456_s1 + $0x370] sm:$0xf]  ;;  %v4144_v19 = vld [vmem:[%s6456_s1 + $0x380] sm:$0xf0]  ;;  %v2846_v23 = vld [vmem:[%s6456_s1 + $0xc8] sm:$0xf] }
   0x6   :  { %2151 = vmatpush.bf16.msra.mxu2 %v3207_v8  ;;  %v3346_v20 = vld [vmem:[%s6456_s1 + $0x4b0] sm:$0xf]  ;;  %v3187_v21 = vor.u32 %v4144_v19, %v3186_v18  ;;  %v4184_v22 = vld [vmem:[%s6456_s1 + $0x4c0] sm:$0xf0]  ;;  %v4059_v24 = vld [vmem:[%s6456_s1 + $0xd8] sm:$0xf0] }
   0x7   :  { %2165 = vmatpush.bf16.msra.mxu3 %v3367_v12  ;;  %v3347_v25 = vor.u32 %v4184_v22, %v3346_v20  ;;  %v3006_v26 = vld [vmem:[%s6456_s1 + $0x208] sm:$0xf]  ;;  %v4099_v27 = vld [vmem:[%s6456_s1 + $0x218] sm:$0xf0]  ;;  %v2847_v29 = vor.u32 %v4059_v24, %v2846_v23  ;;  %v2826_v35 = vld [vmem:[%s6456_s1 + $0xa0] sm:$0xf] }
   0x8   :  { %v3166_v28 = vld [vmem:[%s6456_s1 + $0x348] sm:$0xf]  ;;  %2124 = vmatpush.bf16.msra.mxu0 %v2867_v16  ;;  %v4139_v30 = vld [vmem:[%s6456_s1 + $0x358] sm:$0xf0]  ;;  %v3007_v33 = vor.u32 %v4099_v27, %v3006_v26  ;;  %v4054_v36 = vld [vmem:[%s6456_s1 + $0xb0] sm:$0xf0] }
   0x9   :  { %v3326_v31 = vld [vmem:[%s6456_s1 + $0x488] sm:$0xf]  ;;  %v4179_v32 = vld [vmem:[%s6456_s1 + $0x498] sm:$0xf0]  ;;  %2138 = vmatpush.bf16.msra.mxu1 %v3027_v17  ;;  %v3167_v34 = vor.u32 %v4139_v30, %v3166_v28  ;;  %v2986_v37 = vld [vmem:[%s6456_s1 + $0x1e0] sm:$0xf]  ;;  %v2827_v44 = vor.u32 %v4054_v36, %v2826_v35 }
   0xa   :  { %2152 = vmatpush.bf16.msra.mxu2 %v3187_v21  ;;  %v3327_v38 = vor.u32 %v4179_v32, %v3326_v31  ;;  %v4094_v39 = vld [vmem:[%s6456_s1 + $0x1f0] sm:$0xf0]  ;;  %v3146_v40 = vld [vmem:[%s6456_s1 + $0x320] sm:$0xf]  ;;  %v2806_v47 = vld [vmem:[%s6456_s1 + $0x78] sm:$0xf] }
   0xb   :  { %2166 = vmatpush.bf16.msra.mxu3 %v3347_v25  ;;  %v4134_v41 = vld [vmem:[%s6456_s1 + $0x330] sm:$0xf0]  ;;  %v3306_v42 = vld [vmem:[%s6456_s1 + $0x460] sm:$0xf]  ;;  %v2987_v45 = vor.u32 %v4094_v39, %v2986_v37  ;;  %v4049_v48 = vld [vmem:[%s6456_s1 + $0x88] sm:$0xf0] }
   0xc   :  { %v4174_v43 = vld [vmem:[%s6456_s1 + $0x470] sm:$0xf0]  ;;  %2125 = vmatpush.bf16.msra.mxu0 %v2847_v29  ;;  %v3147_v46 = vor.u32 %v4134_v41, %v3146_v40  ;;  %v2966_v49 = vld [vmem:[%s6456_s1 + $0x1b8] sm:$0xf]  ;;  %v4089_v51 = vld [vmem:[%s6456_s1 + $0x1c8] sm:$0xf0]  ;;  %v2807_v56 = vor.u32 %v4049_v48, %v2806_v47 }
   0xd   :  { %2139 = vmatpush.bf16.msra.mxu1 %v3007_v33  ;;  %v3307_v50 = vor.u32 %v4174_v43, %v3306_v42  ;;  %v3126_v52 = vld [vmem:[%s6456_s1 + $0x2f8] sm:$0xf]  ;;  %v4129_v53 = vld [vmem:[%s6456_s1 + $0x308] sm:$0xf0]  ;;  %v2967_v57 = vor.u32 %v4089_v51, %v2966_v49  ;;  %v2786_v59 = vld [vmem:[%s6456_s1 + $0x50] sm:$0xf] }
   0xe   :  { %2153 = vmatpush.bf16.msra.mxu2 %v3167_v34  ;;  %v3286_v54 = vld [vmem:[%s6456_s1 + $0x438] sm:$0xf]  ;;  %v4169_v55 = vld [vmem:[%s6456_s1 + $0x448] sm:$0xf0]  ;;  %v3127_v58 = vor.u32 %v4129_v53, %v3126_v52  ;;  %v4044_v60 = vld [vmem:[%s6456_s1 + $0x60] sm:$0xf0] }
   0xf   :  { %2167 = vmatpush.bf16.msra.mxu3 %v3327_v38  ;;  %v2946_v61 = vld [vmem:[%s6456_s1 + $0x190] sm:$0xf]  ;;  %v3287_v62 = vor.u32 %v4169_v55, %v3286_v54  ;;  %v4084_v63 = vld [vmem:[%s6456_s1 + $0x1a0] sm:$0xf0]  ;;  %v2787_v4 = vor.u32 %v4044_v60, %v2786_v59  ;;  %v2766_v7 = vld [vmem:[%s6456_s1 + $0x28] sm:$0xf] }
  0x10   :  { %2126 = vmatpush.bf16.msra.mxu0 %v2827_v44  ;;  %v3106_v0 = vld [vmem:[%s6456_s1 + $0x2d0] sm:$0xf]  ;;  %v4124_v1 = vld [vmem:[%s6456_s1 + $0x2e0] sm:$0xf0]  ;;  %v2947_v5 = vor.u32 %v4084_v63, %v2946_v61  ;;  %v4039_v8 = vld [vmem:[%s6456_s1 + $0x38] sm:$0xf0] }
  0x11   :  { %2140 = vmatpush.bf16.msra.mxu1 %v2987_v45  ;;  %v3266_v2 = vld [vmem:[%s6456_s1 + $0x410] sm:$0xf]  ;;  %v4164_v3 = vld [vmem:[%s6456_s1 + $0x420] sm:$0xf0]  ;;  %v3107_v6 = vor.u32 %v4124_v1, %v3106_v0  ;;  %v2926_v9 = vld [vmem:[%s6456_s1 + $0x168] sm:$0xf]  ;;  %v2767_v16 = vor.u32 %v4039_v8, %v2766_v7 }
  0x12   :  { %2154 = vmatpush.bf16.msra.mxu2 %v3147_v46  ;;  %v3267_v10 = vor.u32 %v4164_v3, %v3266_v2  ;;  %v4079_v11 = vld [vmem:[%s6456_s1 + $0x178] sm:$0xf0]  ;;  %v3086_v12 = vld [vmem:[%s6456_s1 + $0x2a8] sm:$0xf]  ;;  %v2746_v17 = vld [vmem:[%s6456_s1] sm:$0xf] }
  0x13   :  { %2168 = vmatpush.bf16.msra.mxu3 %v3307_v50  ;;  %v4119_v13 = vld [vmem:[%s6456_s1 + $0x2b8] sm:$0xf0]  ;;  %v3246_v14 = vld [vmem:[%s6456_s1 + $0x3e8] sm:$0xf]  ;;  %v4034_v18 = vld [vmem:[%s6456_s1 + $0x10] sm:$0xf0]  ;;  %v2927_v19 = vor.u32 %v4079_v11, %v2926_v9 }
  0x14   :  { %2127 = vmatpush.bf16.msra.mxu0 %v2807_v56  ;;  %v4159_v15 = vld [vmem:[%s6456_s1 + $0x3f8] sm:$0xf0]  ;;  %v3087_v20 = vor.u32 %v4119_v13, %v3086_v12  ;;  %v2906_v21 = vld [vmem:[%s6456_s1 + $0x140] sm:$0xf]  ;;  %v4074_v22 = vld [vmem:[%s6456_s1 + $0x150] sm:$0xf0]  ;;  %v2747_v31 = vor.u32 %v4034_v18, %v2746_v17 }
  0x15   :  { %2141 = vmatpush.bf16.msra.mxu1 %v2967_v57  ;;  %v3066_v23 = vld [vmem:[%s6456_s1 + $0x280] sm:$0xf]  ;;  %v3247_v24 = vor.u32 %v4159_v15, %v3246_v14  ;;  %v4114_v25 = vld [vmem:[%s6456_s1 + $0x290] sm:$0xf0]  ;;  %v3526_v28 = vld [vmem:[%s6456_s1 + $0x618] sm:$0xf]  ;;  %v2907_v35 = vor.u32 %v4074_v22, %v2906_v21 }
  0x16   :  { %2155 = vmatpush.bf16.msra.mxu2 %v3127_v58  ;;  %v3226_v26 = vld [vmem:[%s6456_s1 + $0x3c0] sm:$0xf]  ;;  %v4154_v27 = vld [vmem:[%s6456_s1 + $0x3d0] sm:$0xf0]  ;;  %v4229_v29 = vld [vmem:[%s6456_s1 + $0x628] sm:$0xf0]  ;;  %v3067_v36 = vor.u32 %v4114_v25, %v3066_v23 }
  0x17   :  { %2169 = vmatpush.bf16.msra.mxu3 %v3287_v62  ;;  %v3686_v30 = vld [vmem:[%s6456_s1 + $0x758] sm:$0xf]  ;;  %v4269_v32 = vld [vmem:[%s6456_s1 + $0x768] sm:$0xf0]  ;;  %v3227_v39 = vor.u32 %v4154_v27, %v3226_v26  ;;  %v3527_v40 = vor.u32 %v4229_v29, %v3526_v28  ;;  %v3506_v41 = vld [vmem:[%s6456_s1 + $0x5f0] sm:$0xf] }
  0x18   :  { %2128 = vmatpush.bf16.msra.mxu0 %v2787_v4  ;;  %v3846_v33 = vld [vmem:[%s6456_s1 + $0x898] sm:$0xf]  ;;  %v4309_v34 = vld [vmem:[%s6456_s1 + $0x8a8] sm:$0xf0]  ;;  %v4224_v42 = vld [vmem:[%s6456_s1 + $0x600] sm:$0xf0]  ;;  %v3687_v43 = vor.u32 %v4269_v32, %v3686_v30 }
  0x19   :  { %2142 = vmatpush.bf16.msra.mxu1 %v2947_v5  ;;  %v4006_v37 = vld [vmem:[%s6456_s1 + $0x9d8] sm:$0xf]  ;;  %v4349_v38 = vld [vmem:[%s6456_s1 + $0x9e8] sm:$0xf0]  ;;  %v3847_v44 = vor.u32 %v4309_v34, %v3846_v33  ;;  %v3666_v45 = vld [vmem:[%s6456_s1 + $0x730] sm:$0xf]  ;;  %v3507_v55 = vor.u32 %v4224_v42, %v3506_v41 }
  0x1a   :  { %2156 = vmatpush.bf16.msra.mxu2 %v3107_v6  ;;  %v4264_v46 = vld [vmem:[%s6456_s1 + $0x740] sm:$0xf0]  ;;  %v3826_v47 = vld [vmem:[%s6456_s1 + $0x870] sm:$0xf]  ;;  %v4007_v48 = vor.u32 %v4349_v38, %v4006_v37  ;;  %v2714_v52 = vld [vmem:[%s6455_s0] sm:$0xf] }
  0x1b   :  { %2170 = vmatpush.bf16.msra.mxu3 %v3267_v10  ;;  %v4304_v49 = vld [vmem:[%s6456_s1 + $0x880] sm:$0xf0]  ;;  %v3986_v50 = vld [vmem:[%s6456_s1 + $0x9b0] sm:$0xf]  ;;  %v4028_v53 = vld [vmem:[%s6455_s0 + $0x1c] sm:$0xf0]  ;;  %v3667_v60 = vor.u32 %v4264_v46, %v3666_v45 }
  0x1c   :  { %2129 = vmatpush.bf16.msra.mxu0 %v2767_v16  ;;  %v4344_v51 = vld [vmem:[%s6456_s1 + $0x9c0] sm:$0xf0]  ;;  %v2722_v54 = vld [vmem:[%s6455_s0 + $0x8] sm:$0xf]  ;;  %v4219_v57 = vld [vmem:[%s6456_s1 + $0x5d8] sm:$0xf0]  ;;  %v4660_v58 = vor.u32 %v4028_v53, %v2714_v52  ;;  %v3827_v61 = vor.u32 %v4304_v49, %v3826_v47 }
  0x1d   :  { %2143 = vmatpush.bf16.msra.mxu1 %v2927_v19  ;;  %v3486_v56 = vld [vmem:[%s6456_s1 + $0x5c8] sm:$0xf]  ;;  %v4259_v63 = vld [vmem:[%s6456_s1 + $0x718] sm:$0xf0]  ;;  %v3987_v2 = vor.u32 %v4344_v51, %v3986_v50  ;;  %v4024_v6 = vld [vmem:[%s6455_s0 + $0x4] sm:$0xf] }
  0x1e   :  { %2157 = vmatpush.bf16.msra.mxu2 %v3087_v20  ;;  %v4029_v59 = vld [vmem:[%s6455_s0 + $0x24] sm:$0xf0]  ;;  %v4299_v3 = vld [vmem:[%s6456_s1 + $0x858] sm:$0xf0]  ;;  %v2716_v7 = vld [vmem:[%s6455_s0 + $0x20] sm:$0xf0]  ;;  %v3487_v9 = vor.u32 %v4219_v57, %v3486_v56 }
  0x1f   :  { %2171 = vmatpush.bf16.msra.mxu3 %v3247_v24  ;;  %v3646_v62 = vld [vmem:[%s6456_s1 + $0x708] sm:$0xf]  ;;  %v4674_v1 = vor.u32 %v4029_v59, %v2722_v54  ;;  %v4339_v5 = vld [vmem:[%s6456_s1 + $0x998] sm:$0xf0]  ;;  %v4025_v8 = vld [vmem:[%s6455_s0 + $0xc] sm:$0xf]  ;;  %v4696_v10 = vor.u32 %v4024_v6, %v2716_v7 }
  0x20   :  { %2130 = vmatpush.bf16.msra.mxu0 %v2747_v31  ;;  %v3806_v0 = vld [vmem:[%s6456_s1 + $0x848] sm:$0xf]  ;;  %v2724_v11 = vld [vmem:[%s6455_s0 + $0x28] sm:$0xf0]  ;;  %v3647_v12 = vor.u32 %v4259_v63, %v3646_v62  ;;  %v3466_v14 = vld [vmem:[%s6456_s1 + $0x5a0] sm:$0xf] }
  0x21   :  { %2144 = vmatpush.bf16.msra.mxu1 %v2907_v35  ;;  %v3966_v4 = vld [vmem:[%s6456_s1 + $0x988] sm:$0xf]  ;;  %v3807_v13 = vor.u32 %v4299_v3, %v3806_v0  ;;  %v4214_v15 = vld [vmem:[%s6456_s1 + $0x5b0] sm:$0xf0]  ;;  %v3626_v16 = vld [vmem:[%s6456_s1 + $0x6e0] sm:$0xf]  ;;  %v4710_v17 = vor.u32 %v4025_v8, %v2724_v11 }
  0x22   :  { %2158 = vmatpush.bf16.msra.mxu2 %v3067_v36  ;;  %v3967_v18 = vor.u32 %v4339_v5, %v3966_v4  ;;  %v4254_v19 = vld [vmem:[%s6456_s1 + $0x6f0] sm:$0xf0]  ;;  %v3786_v20 = vld [vmem:[%s6456_s1 + $0x820] sm:$0xf]  ;;  %v3467_v24 = vor.u32 %v4214_v15, %v3466_v14  ;;  %v3446_v27 = vld [vmem:[%s6456_s1 + $0x578] sm:$0xf] }
  0x23   :  { %2172 = vmatpush.bf16.msra.mxu3 %v3227_v39  ;;  %2131 = vmatmul.bf16.vlgmr.msra.gmra.mxu0 %v4660_v58  ;;  %v4294_v21 = vld [vmem:[%s6456_s1 + $0x830] sm:$0xf0]  ;;  %v3946_v22 = vld [vmem:[%s6456_s1 + $0x960] sm:$0xf]  ;;  %v3627_v25 = vor.u32 %v4254_v19, %v3626_v16  ;;  %v4209_v28 = vld [vmem:[%s6456_s1 + $0x588] sm:$0xf0] }
  0x24   :  { %2179 = vmatpush.bf16.msrb.mxu0 %v3527_v40  ;;  %2145 = vmatmul.bf16.vlgmr.msra.gmra.mxu1 %v4696_v10  ;;  %v4334_v23 = vld [vmem:[%s6456_s1 + $0x970] sm:$0xf0]  ;;  %v3787_v26 = vor.u32 %v4294_v21, %v3786_v20  ;;  %v3606_v29 = vld [vmem:[%s6456_s1 + $0x6b8] sm:$0xf]  ;;  %v4249_v31 = vld [vmem:[%s6456_s1 + $0x6c8] sm:$0xf0]  ;;  %v3447_v36 = vor.u32 %v4209_v28, %v3446_v27 }
  0x25   :  { %2193 = vmatpush.bf16.msrb.mxu1 %v3687_v43  ;;  %2159 = vmatmul.bf16.vlgmr.msra.gmra.mxu2 %v4674_v1  ;;  %v3947_v30 = vor.u32 %v4334_v23, %v3946_v22  ;;  %v3766_v32 = vld [vmem:[%s6456_s1 + $0x7f8] sm:$0xf]  ;;  %v4289_v33 = vld [vmem:[%s6456_s1 + $0x808] sm:$0xf0]  ;;  %v3607_v37 = vor.u32 %v4249_v31, %v3606_v29  ;;  %v3426_v39 = vld [vmem:[%s6456_s1 + $0x550] sm:$0xf] }
  0x26   :  { %2207 = vmatpush.bf16.msrb.mxu2 %v3847_v44  ;;  %2173 = vmatmul.bf16.vlgmr.msra.gmra.mxu3 %v4710_v17  ;;  %v3926_v34 = vld [vmem:[%s6456_s1 + $0x938] sm:$0xf]  ;;  %v4329_v35 = vld [vmem:[%s6456_s1 + $0x948] sm:$0xf0]  ;;  %v3767_v38 = vor.u32 %v4289_v33, %v3766_v32  ;;  %v4204_v40 = vld [vmem:[%s6456_s1 + $0x560] sm:$0xf0] }
  0x27   :  { %2221 = vmatpush.bf16.msrb.mxu3 %v4007_v48  ;;  %v3586_v41 = vld [vmem:[%s6456_s1 + $0x690] sm:$0xf]  ;;  %v3927_v42 = vor.u32 %v4329_v35, %v3926_v34  ;;  %v4244_v43 = vld [vmem:[%s6456_s1 + $0x6a0] sm:$0xf0]  ;;  %v3427_v48 = vor.u32 %v4204_v40, %v3426_v39  ;;  %v3406_v49 = vld [vmem:[%s6456_s1 + $0x528] sm:$0xf] }
  0x28   :  { %2180 = vmatpush.bf16.msrb.mxu0 %v3507_v55  ;;  %v3746_v44 = vld [vmem:[%s6456_s1 + $0x7d0] sm:$0xf]  ;;  %v4284_v45 = vld [vmem:[%s6456_s1 + $0x7e0] sm:$0xf0]  ;;  %v3587_v50 = vor.u32 %v4244_v43, %v3586_v41  ;;  %v4199_v52 = vld [vmem:[%s6456_s1 + $0x538] sm:$0xf0] }
  0x29   :  { %2194 = vmatpush.bf16.msrb.mxu1 %v3667_v60  ;;  %v3906_v46 = vld [vmem:[%s6456_s1 + $0x910] sm:$0xf]  ;;  %v4324_v47 = vld [vmem:[%s6456_s1 + $0x920] sm:$0xf0]  ;;  %v3747_v51 = vor.u32 %v4284_v45, %v3746_v44  ;;  %v3566_v53 = vld [vmem:[%s6456_s1 + $0x668] sm:$0xf]  ;;  %v3407_v63 = vor.u32 %v4199_v52, %v3406_v49 }
  0x2a   :  { %2208 = vmatpush.bf16.msrb.mxu2 %v3827_v61  ;;  %v4239_v54 = vld [vmem:[%s6456_s1 + $0x678] sm:$0xf0]  ;;  %v3907_v55 = vor.u32 %v4324_v47, %v3906_v46  ;;  %v3726_v56 = vld [vmem:[%s6456_s1 + $0x7a8] sm:$0xf]  ;;  %v3386_v61 = vld [vmem:[%s6456_s1 + $0x500] sm:$0xf] }
  0x2b   :  { %2222 = vmatpush.bf16.msrb.mxu3 %v3987_v2  ;;  %v4279_v57 = vld [vmem:[%s6456_s1 + $0x7b8] sm:$0xf0]  ;;  %v3886_v59 = vld [vmem:[%s6456_s1 + $0x8e8] sm:$0xf]  ;;  %v4194_v62 = vld [vmem:[%s6456_s1 + $0x510] sm:$0xf0]  ;;  %v3567_v5 = vor.u32 %v4239_v54, %v3566_v53 }
  0x2c   :  { %2181 = vmatpush.bf16.msrb.mxu0 %v3487_v9  ;;  %v4319_v60 = vld [vmem:[%s6456_s1 + $0x8f8] sm:$0xf0]  ;;  %v3546_v0 = vld [vmem:[%s6456_s1 + $0x640] sm:$0xf]  ;;  %v4234_v2 = vld [vmem:[%s6456_s1 + $0x650] sm:$0xf0]  ;;  %v3727_v6 = vor.u32 %v4279_v57, %v3726_v56  ;;  %v3387_v19 = vor.u32 %v4194_v62, %v3386_v61 }
  0x2d   :  { %2195 = vmatpush.bf16.msrb.mxu1 %v3647_v12  ;;  %v3706_v3 = vld [vmem:[%s6456_s1 + $0x780] sm:$0xf]  ;;  %v4274_v4 = vld [vmem:[%s6456_s1 + $0x790] sm:$0xf0]  ;;  %v4067_v9 = vld [vmem:[%s6456_s1 + $0x11c] sm:$0xf]  ;;  %v3887_v11 = vor.u32 %v4319_v60, %v3886_v59  ;;  %v3547_v23 = vor.u32 %v4234_v2, %v3546_v0 }
  0x2e   :  { %2209 = vmatpush.bf16.msrb.mxu2 %v3807_v13  ;;  %v3866_v7 = vld [vmem:[%s6456_s1 + $0x8c0] sm:$0xf]  ;;  %v4314_v8 = vld [vmem:[%s6456_s1 + $0x8d0] sm:$0xf0]  ;;  %v2888_v12 = vld [vmem:[%s6456_s1 + $0x12c] sm:$0xf0] }
  0x2f   :  { %2223 = vmatpush.bf16.msrb.mxu3 %v3967_v18  ;;  %v4107_v13 = vld [vmem:[%s6456_s1 + $0x25c] sm:$0xf]  ;;  %v3048_v14 = vld [vmem:[%s6456_s1 + $0x26c] sm:$0xf0]  ;;  %v4026_v27 = vld [vmem:[%s6455_s0 + $0x14] sm:$0xf]  ;;  %v3867_v28 = vor.u32 %v4314_v8, %v3866_v7  ;;  %v2891_v29 = vor.u32 %v4067_v9, %v2888_v12 }
  0x30   :  { %2182 = vmatpush.bf16.msrb.mxu0 %v3467_v24  ;;  %v4147_v15 = vld [vmem:[%s6456_s1 + $0x39c] sm:$0xf]  ;;  %v3208_v16 = vld [vmem:[%s6456_s1 + $0x3ac] sm:$0xf0]  ;;  %v3707_v24 = vor.u32 %v4274_v4, %v3706_v3  ;;  %v3051_v33 = vor.u32 %v4107_v13, %v3048_v14  ;;  %v4062_v35 = vld [vmem:[%s6456_s1 + $0xf4] sm:$0xf] }
  0x31   :  { %2196 = vmatpush.bf16.msrb.mxu1 %v3627_v25  ;;  %v4187_v18 = vld [vmem:[%s6456_s1 + $0x4dc] sm:$0xf]  ;;  %v3368_v20 = vld [vmem:[%s6456_s1 + $0x4ec] sm:$0xf0]  ;;  %v2738_v25 = vld [vmem:[%s6455_s0 + $0x18] sm:$0xf]  ;;  %v3211_v34 = vor.u32 %v4147_v15, %v3208_v16 }
  0x32   :  { %2210 = vmatpush.bf16.msrb.mxu2 %v3787_v26  ;;  %v2730_v21 = vld [vmem:[%s6455_s0 + $0x10] sm:$0xf]  ;;  %v4031_v26 = vld [vmem:[%s6455_s0 + $0x34] sm:$0xf0]  ;;  %v4027_v31 = vld [vmem:[%s6455_s0 + $0x1c] sm:$0xf] }
  0x33   :  { %2224 = vmatpush.bf16.msrb.mxu3 %v3947_v30  ;;  %v4030_v22 = vld [vmem:[%s6455_s0 + $0x2c] sm:$0xf0]  ;;  %v2732_v30 = vld [vmem:[%s6455_s0 + $0x30] sm:$0xf0]  ;;  %v2740_v32 = vld [vmem:[%s6455_s0 + $0x38] sm:$0xf0]  ;;  %v4893_v43 = vor.u32 %v4031_v26, %v2738_v25 }
  0x34   :  { %2183 = vmatpush.bf16.msrb.mxu0 %v3447_v36  ;;  %v2868_v36 = vld [vmem:[%s6456_s1 + $0x104] sm:$0xf0]  ;;  %v4882_v39 = vor.u32 %v4030_v22, %v2730_v21  ;;  %v4142_v41 = vld [vmem:[%s6456_s1 + $0x374] sm:$0xf]  ;;  %v4895_v44 = vor.u32 %v4026_v27, %v2732_v30  ;;  %v4903_v47 = vor.u32 %v4027_v31, %v2740_v32  ;;  %v2848_v52 = vld [vmem:[%s6456_s1 + $0xdc] sm:$0xf0] }
  0x35   :  { %2197 = vmatpush.bf16.msrb.mxu1 %v3607_v37  ;;  %v4102_v37 = vld [vmem:[%s6456_s1 + $0x234] sm:$0xf]  ;;  %v3028_v40 = vld [vmem:[%s6456_s1 + $0x244] sm:$0xf0]  ;;  %v4097_v53 = vld [vmem:[%s6456_s1 + $0x20c] sm:$0xf] }
  0x36   :  { %2211 = vmatpush.bf16.msrb.mxu2 %v3767_v38  ;;  %v3371_v38 = vor.u32 %v4187_v18, %v3368_v20  ;;  %v4182_v45 = vld [vmem:[%s6456_s1 + $0x4b4] sm:$0xf]  ;;  %v3348_v46 = vld [vmem:[%s6456_s1 + $0x4c4] sm:$0xf0]  ;;  %v3031_v49 = vor.u32 %v4102_v37, %v3028_v40  ;;  %v4137_v56 = vld [vmem:[%s6456_s1 + $0x34c] sm:$0xf] }
  0x37   :  { %2225 = vmatpush.bf16.msrb.mxu3 %v3927_v42  ;;  %v3188_v42 = vld [vmem:[%s6456_s1 + $0x384] sm:$0xf0]  ;;  %v3351_v54 = vor.u32 %v4182_v45, %v3348_v46  ;;  %v3168_v57 = vld [vmem:[%s6456_s1 + $0x35c] sm:$0xf0]  ;;  %v4177_v59 = vld [vmem:[%s6456_s1 + $0x48c] sm:$0xf] }
  0x38   :  { %2184 = vmatpush.bf16.msrb.mxu0 %v3427_v48  ;;  %v2871_v48 = vor.u32 %v4062_v35, %v2868_v36  ;;  %v3328_v60 = vld [vmem:[%s6456_s1 + $0x49c] sm:$0xf0]  ;;  %v4052_v0 = vld [vmem:[%s6456_s1 + $0xa4] sm:$0xf]  ;;  %v2828_v2 = vld [vmem:[%s6456_s1 + $0xb4] sm:$0xf0] }
  0x39   :  { %2198 = vmatpush.bf16.msrb.mxu1 %v3587_v50  ;;  %v3191_v50 = vor.u32 %v4142_v41, %v3188_v42  ;;  %v4092_v3 = vld [vmem:[%s6456_s1 + $0x1e4] sm:$0xf]  ;;  %v3331_v4 = vor.u32 %v4177_v59, %v3328_v60  ;;  %v3148_v7 = vld [vmem:[%s6456_s1 + $0x334] sm:$0xf0]  ;;  %v4047_v14 = vld [vmem:[%s6456_s1 + $0x7c] sm:$0xf] }
  0x3a   :  { %2212 = vmatpush.bf16.msrb.mxu2 %v3747_v51  ;;  %v4057_v51 = vld [vmem:[%s6456_s1 + $0xcc] sm:$0xf]  ;;  %v4172_v8 = vld [vmem:[%s6456_s1 + $0x464] sm:$0xf]  ;;  %v3308_v9 = vld [vmem:[%s6456_s1 + $0x474] sm:$0xf0] }
  0x3b   :  { %2226 = vmatpush.bf16.msrb.mxu3 %v3907_v55  ;;  %v3008_v55 = vld [vmem:[%s6456_s1 + $0x21c] sm:$0xf0]  ;;  %v2851_v61 = vor.u32 %v4057_v51, %v2848_v52  ;;  %v2808_v15 = vld [vmem:[%s6456_s1 + $0x8c] sm:$0xf0]  ;;  %v4087_v16 = vld [vmem:[%s6456_s1 + $0x1bc] sm:$0xf]  ;;  %v3311_v18 = vor.u32 %v4172_v8, %v3308_v9 }
  0x3c   :  { %2185 = vmatpush.bf16.msrb.mxu0 %v3407_v63  ;;  %v3011_v62 = vor.u32 %v4097_v53, %v3008_v55  ;;  %v3171_v63 = vor.u32 %v4137_v56, %v3168_v57  ;;  %v4127_v20 = vld [vmem:[%s6456_s1 + $0x2fc] sm:$0xf]  ;;  %v3128_v21 = vld [vmem:[%s6456_s1 + $0x30c] sm:$0xf0]  ;;  %v4042_v27 = vld [vmem:[%s6456_s1 + $0x54] sm:$0xf] }
  0x3d   :  { %2199 = vmatpush.bf16.msrb.mxu1 %v3567_v5  ;;  %v2988_v5 = vld [vmem:[%s6456_s1 + $0x1f4] sm:$0xf0]  ;;  %v4167_v22 = vld [vmem:[%s6456_s1 + $0x43c] sm:$0xf]  ;;  %v3131_v26 = vor.u32 %v4127_v20, %v3128_v21  ;;  %v2948_v31 = vld [vmem:[%s6456_s1 + $0x1a4] sm:$0xf0] }
  0x3e   :  { %2213 = vmatpush.bf16.msrb.mxu2 %v3727_v6  ;;  %v4132_v6 = vld [vmem:[%s6456_s1 + $0x324] sm:$0xf]  ;;  %v2991_v12 = vor.u32 %v4092_v3, %v2988_v5  ;;  %v4122_v32 = vld [vmem:[%s6456_s1 + $0x2d4] sm:$0xf]  ;;  %v3268_v35 = vld [vmem:[%s6456_s1 + $0x424] sm:$0xf0] }
  0x3f   :  { %2227 = vmatpush.bf16.msrb.mxu3 %v3887_v11  ;;  %v2831_v11 = vor.u32 %v4052_v0, %v2828_v2  ;;  %v3151_v13 = vor.u32 %v4132_v6, %v3148_v7  ;;  %v4037_v40 = vld [vmem:[%s6456_s1 + $0x2c] sm:$0xf]  ;;  %v2768_v41 = vld [vmem:[%s6456_s1 + $0x3c] sm:$0xf0]  ;;  %v4032_v53 = vld [vmem:[%s6456_s1 + $0x4] sm:$0xf] }
  0x40   :  { %2186 = vmatpush.bf16.msrb.mxu0 %v3387_v19  ;;  %v2968_v19 = vld [vmem:[%s6456_s1 + $0x1cc] sm:$0xf0]  ;;  %v4077_v42 = vld [vmem:[%s6456_s1 + $0x16c] sm:$0xf]  ;;  %v2928_v46 = vld [vmem:[%s6456_s1 + $0x17c] sm:$0xf0]  ;;  %v2771_v52 = vor.u32 %v4037_v40, %v2768_v41 }
  0x41   :  { %2200 = vmatpush.bf16.msrb.mxu1 %v3547_v23  ;;  %v3288_v23 = vld [vmem:[%s6456_s1 + $0x44c] sm:$0xf0]  ;;  %v2971_v25 = vor.u32 %v4087_v16, %v2968_v19  ;;  %v3248_v51 = vld [vmem:[%s6456_s1 + $0x3fc] sm:$0xf0]  ;;  %v2931_v55 = vor.u32 %v4077_v42, %v2928_v46  ;;  %v4072_v57 = vld [vmem:[%s6456_s1 + $0x144] sm:$0xf] }
  0x42   :  { %2214 = vmatpush.bf16.msrb.mxu2 %v3707_v24  ;;  %v2811_v24 = vor.u32 %v4047_v14, %v2808_v15  ;;  %v3291_v30 = vor.u32 %v4167_v22, %v3288_v23  ;;  %v2908_v59 = vld [vmem:[%s6456_s1 + $0x154] sm:$0xf0]  ;;  %v4112_v60 = vld [vmem:[%s6456_s1 + $0x284] sm:$0xf]  ;;  %v4227_v2 = vld [vmem:[%s6456_s1 + $0x61c] sm:$0xf] }
  0x43   :  { %2228 = vmatpush.bf16.msrb.mxu3 %v3867_v28  ;;  %2187 = vmatmul.bf16.vlgmr.msrb.gmra.mxu0 %v4882_v39  ;;  %v2788_v28 = vld [vmem:[%s6456_s1 + $0x64] sm:$0xf0]  ;;  %v3228_v0 = vld [vmem:[%s6456_s1 + $0x3d4] sm:$0xf0]  ;;  %v3528_v3 = vld [vmem:[%s6456_s1 + $0x62c] sm:$0xf0]  ;;  %v2911_v9 = vor.u32 %v4072_v57, %v2908_v59 }
  0x44   :  { %2235 = vmatpush.bf16.msra.mxu0 %v2891_v29  ;;  %2201 = vmatmul.bf16.vlgmr.msrb.gmra.mxu1 %v4895_v44  ;;  %v4082_v29 = vld [vmem:[%s6456_s1 + $0x194] sm:$0xf]  ;;  %v2791_v36 = vor.u32 %v4042_v27, %v2788_v28  ;;  %v3688_v6 = vld [vmem:[%s6456_s1 + $0x76c] sm:$0xf0]  ;;  %v4307_v7 = vld [vmem:[%s6456_s1 + $0x89c] sm:$0xf]  ;;  %v3531_v15 = vor.u32 %v4227_v2, %v3528_v3 }
  0x45   :  { %2249 = vmatpush.bf16.msra.mxu1 %v3051_v33  ;;  %2215 = vmatmul.bf16.vlgmr.msrb.gmra.mxu2 %v4893_v43  ;;  %v3108_v33 = vld [vmem:[%s6456_s1 + $0x2e4] sm:$0xf0]  ;;  %v2951_v37 = vor.u32 %v4082_v29, %v2948_v31  ;;  %v3848_v8 = vld [vmem:[%s6456_s1 + $0x8ac] sm:$0xf0]  ;;  %v4222_v19 = vld [vmem:[%s6456_s1 + $0x5f4] sm:$0xf] }
  0x46   :  { %2263 = vmatpush.bf16.msra.mxu2 %v3211_v34  ;;  %2229 = vmatmul.bf16.vlgmr.msrb.gmra.mxu3 %v4903_v47  ;;  %v4162_v34 = vld [vmem:[%s6456_s1 + $0x414] sm:$0xf]  ;;  %v3508_v20 = vld [vmem:[%s6456_s1 + $0x604] sm:$0xf0] }
  0x47   :  { %2277 = vmatpush.bf16.msra.mxu3 %v3371_v38  ;;  %v3111_v38 = vor.u32 %v4122_v32, %v3108_v33  ;;  %v3271_v45 = vor.u32 %v4162_v34, %v3268_v35  ;;  %v4262_v21 = vld [vmem:[%s6456_s1 + $0x734] sm:$0xf]  ;;  %v3668_v23 = vld [vmem:[%s6456_s1 + $0x744] sm:$0xf0]  ;;  %v3511_v28 = vor.u32 %v4222_v19, %v3508_v20 }
  0x48   :  { %2236 = vmatpush.bf16.msra.mxu0 %v2871_v48  ;;  %v4117_v48 = vld [vmem:[%s6456_s1 + $0x2ac] sm:$0xf]  ;;  %v3988_v27 = vld [vmem:[%s6456_s1 + $0x9c4] sm:$0xf0] }
  0x49   :  { %2250 = vmatpush.bf16.msra.mxu1 %v3031_v49  ;;  %v3088_v49 = vld [vmem:[%s6456_s1 + $0x2bc] sm:$0xf0] }
  0x4a   :  { %2264 = vmatpush.bf16.msra.mxu2 %v3191_v50  ;;  %v4157_v50 = vld [vmem:[%s6456_s1 + $0x3ec] sm:$0xf]  ;;  %v3091_v56 = vor.u32 %v4117_v48, %v3088_v49 }
  0x4b   :  { %2278 = vmatpush.bf16.msra.mxu3 %v3351_v54  ;;  %v2748_v54 = vld [vmem:[%s6456_s1 + $0x14] sm:$0xf0] }
  0x4c   :  { %2237 = vmatpush.bf16.msra.mxu0 %v2851_v61  ;;  %v3251_v61 = vor.u32 %v4157_v50, %v3248_v51  ;;  %v2751_v5 = vor.u32 %v4032_v53, %v2748_v54 }
  0x4d   :  { %2251 = vmatpush.bf16.msra.mxu1 %v3011_v62  ;;  %v3068_v62 = vld [vmem:[%s6456_s1 + $0x294] sm:$0xf0] }
  0x4e   :  { %2265 = vmatpush.bf16.msra.mxu2 %v3171_v63  ;;  %v4152_v63 = vld [vmem:[%s6456_s1 + $0x3c4] sm:$0xf] }
  0x4f   :  { %2279 = vmatpush.bf16.msra.mxu3 %v3331_v4  ;;  %v4267_v4 = vld [vmem:[%s6456_s1 + $0x75c] sm:$0xf]  ;;  %v3231_v14 = vor.u32 %v4152_v63, %v3228_v0 }
  0x50   :  { %2238 = vmatpush.bf16.msra.mxu0 %v2831_v11  ;;  %v3071_v11 = vor.u32 %v4112_v60, %v3068_v62  ;;  %v3691_v16 = vor.u32 %v4267_v4, %v3688_v6 }
  0x51   :  { %2252 = vmatpush.bf16.msra.mxu1 %v2991_v12  ;;  %v4347_v12 = vld [vmem:[%s6456_s1 + $0x9dc] sm:$0xf] }
  0x52   :  { %2266 = vmatpush.bf16.msra.mxu2 %v3151_v13  ;;  %v4008_v13 = vld [vmem:[%s6456_s1 + $0x9ec] sm:$0xf0] }
  0x53   :  { %2280 = vmatpush.bf16.msra.mxu3 %v3311_v18  ;;  %v3851_v18 = vor.u32 %v4307_v7, %v3848_v8  ;;  %v4011_v22 = vor.u32 %v4347_v12, %v4008_v13 }
  0x54   :  { %2239 = vmatpush.bf16.msra.mxu0 %v2811_v24  ;;  %v4302_v24 = vld [vmem:[%s6456_s1 + $0x874] sm:$0xf] }
  0x55   :  { %2253 = vmatpush.bf16.msra.mxu1 %v2971_v25  ;;  %v3828_v25 = vld [vmem:[%s6456_s1 + $0x884] sm:$0xf0] }
  0x56   :  { %2267 = vmatpush.bf16.msra.mxu2 %v3131_v26  ;;  %v4342_v26 = vld [vmem:[%s6456_s1 + $0x9b4] sm:$0xf] }
  0x57   :  { %2281 = vmatpush.bf16.msra.mxu3 %v3291_v30 }
  0x58   :  { %2240 = vmatpush.bf16.msra.mxu0 %v2791_v36 }
  0x59   :  { %2254 = vmatpush.bf16.msra.mxu1 %v2951_v37 }
  0x5a   :  { %2268 = vmatpush.bf16.msra.mxu2 %v3111_v38 }
  0x5b   :  { %2282 = vmatpush.bf16.msra.mxu3 %v3271_v45 }
  0x5c   :  { %2241 = vmatpush.bf16.msra.mxu0 %v2771_v52 }
  0x5d   :  { %2255 = vmatpush.bf16.msra.mxu1 %v2931_v55 }
  0x5e   :  { %2269 = vmatpush.bf16.msra.mxu2 %v3091_v56 }
  0x5f   :  { %2283 = vmatpush.bf16.msra.mxu3 %v3251_v61 }
  0x60   :  { %2242 = vmatpush.bf16.msra.mxu0 %v2751_v5 }
  0x61   :  { %2256 = vmatpush.bf16.msra.mxu1 %v2911_v9 }
  0x62   :  { %2270 = vmatpush.bf16.msra.mxu2 %v3071_v11 }
  0x63   :  { %2284 = vmatpush.bf16.msra.mxu3 %v3231_v14 }
  0x64   :  { %2291 = vmatpush.bf16.msrb.mxu0 %v3531_v15 }
  0x65   :  { %8 = vsyncpa [#allocation3], 0  ;;  %2305 = vmatpush.bf16.msrb.mxu1 %v3691_v16  ;;  %v3671_v29 = vor.u32 %v4262_v21, %v3668_v23  ;;  %v3831_v30 = vor.u32 %v4302_v24, %v3828_v25  ;;  %v4217_v31 = vld [vmem:[%s6456_s1 + $0x5cc] sm:$0xf]  ;;  %v3488_v32 = vld [vmem:[%s6456_s1 + $0x5dc] sm:$0xf0]  ;;  %v3991_v34 = vor.u32 %v4342_v26, %v3988_v27  ;;  %2243 = vmatmul.bf16.vlgmr.msra.gmra.mxu0 %v4660_v58 }
  0x66   :  { %2319 = vmatpush.bf16.msrb.mxu2 %v3851_v18  ;;  %v4257_v33 = vld [vmem:[%s6456_s1 + $0x70c] sm:$0xf]  ;;  %v3648_v35 = vld [vmem:[%s6456_s1 + $0x71c] sm:$0xf0]  ;;  %2257 = vmatmul.bf16.vlgmr.msra.gmra.mxu1 %v4696_v10  ;;  %v3491_v41 = vor.u32 %v4217_v31, %v3488_v32  ;;  %v4212_v46 = vld [vmem:[%s6456_s1 + $0x5a4] sm:$0xf] }
  0x67   :  { %2333 = vmatpush.bf16.msrb.mxu3 %v4011_v22  ;;  %v4297_v36 = vld [vmem:[%s6456_s1 + $0x84c] sm:$0xf]  ;;  %v3808_v37 = vld [vmem:[%s6456_s1 + $0x85c] sm:$0xf0]  ;;  %2271 = vmatmul.bf16.vlgmr.msra.gmra.mxu2 %v4674_v1  ;;  %v3651_v42 = vor.u32 %v4257_v33, %v3648_v35  ;;  %v3468_v48 = vld [vmem:[%s6456_s1 + $0x5b4] sm:$0xf0] }
  0x68   :  { %v4337_v38 = vld [vmem:[%s6456_s1 + $0x98c] sm:$0xf]  ;;  %v3968_v40 = vld [vmem:[%s6456_s1 + $0x99c] sm:$0xf0]  ;;  %2292 = vmatpush.bf16.msrb.mxu0 %v3511_v28  ;;  %2285 = vmatmul.bf16.vlgmr.msra.gmra.mxu3 %v4710_v17  ;;  %v3811_v45 = vor.u32 %v4297_v36, %v3808_v37  ;;  %v4252_v49 = vld [vmem:[%s6456_s1 + $0x6e4] sm:$0xf]  ;;  %v3471_v56 = vor.u32 %v4212_v46, %v3468_v48 }
  0x69   :  { %2306 = vmatpush.bf16.msrb.mxu1 %v3671_v29  ;;  %v3971_v50 = vor.u32 %v4337_v38, %v3968_v40  ;;  %v3628_v51 = vld [vmem:[%s6456_s1 + $0x6f4] sm:$0xf0]  ;;  %v4292_v52 = vld [vmem:[%s6456_s1 + $0x824] sm:$0xf]  ;;  %v4207_v60 = vld [vmem:[%s6456_s1 + $0x57c] sm:$0xf] }
  0x6a   :  { %2320 = vmatpush.bf16.msrb.mxu2 %v3831_v30  ;;  %v3788_v53 = vld [vmem:[%s6456_s1 + $0x834] sm:$0xf0]  ;;  %v4332_v54 = vld [vmem:[%s6456_s1 + $0x964] sm:$0xf]  ;;  %v3631_v57 = vor.u32 %v4252_v49, %v3628_v51  ;;  %v3448_v61 = vld [vmem:[%s6456_s1 + $0x58c] sm:$0xf0] }
  0x6b   :  { %2334 = vmatpush.bf16.msrb.mxu3 %v3991_v34  ;;  %v3948_v55 = vld [vmem:[%s6456_s1 + $0x974] sm:$0xf0]  ;;  %v3791_v59 = vor.u32 %v4292_v52, %v3788_v53  ;;  %v4247_v62 = vld [vmem:[%s6456_s1 + $0x6bc] sm:$0xf]  ;;  %v3608_v0 = vld [vmem:[%s6456_s1 + $0x6cc] sm:$0xf0]  ;;  %v3451_v6 = vor.u32 %v4207_v60, %v3448_v61 }
  0x6c   :  { %2293 = vmatpush.bf16.msrb.mxu0 %v3491_v41  ;;  %v3951_v63 = vor.u32 %v4332_v54, %v3948_v55  ;;  %v4287_v2 = vld [vmem:[%s6456_s1 + $0x7fc] sm:$0xf]  ;;  %v3768_v3 = vld [vmem:[%s6456_s1 + $0x80c] sm:$0xf0]  ;;  %v3611_v7 = vor.u32 %v4247_v62, %v3608_v0  ;;  %v4202_v9 = vld [vmem:[%s6456_s1 + $0x554] sm:$0xf] }
  0x6d   :  { %2307 = vmatpush.bf16.msrb.mxu1 %v3651_v42  ;;  %v4327_v4 = vld [vmem:[%s6456_s1 + $0x93c] sm:$0xf]  ;;  %v3928_v5 = vld [vmem:[%s6456_s1 + $0x94c] sm:$0xf0]  ;;  %v3771_v8 = vor.u32 %v4287_v2, %v3768_v3  ;;  %v3428_v11 = vld [vmem:[%s6456_s1 + $0x564] sm:$0xf0] }
  0x6e   :  { %2321 = vmatpush.bf16.msrb.mxu2 %v3811_v45  ;;  %v4242_v12 = vld [vmem:[%s6456_s1 + $0x694] sm:$0xf]  ;;  %v3931_v13 = vor.u32 %v4327_v4, %v3928_v5  ;;  %v3588_v14 = vld [vmem:[%s6456_s1 + $0x6a4] sm:$0xf0]  ;;  %v3431_v20 = vor.u32 %v4202_v9, %v3428_v11  ;;  %v4197_v23 = vld [vmem:[%s6456_s1 + $0x52c] sm:$0xf] }
  0x6f   :  { %2335 = vmatpush.bf16.msrb.mxu3 %v3971_v50  ;;  %v4282_v15 = vld [vmem:[%s6456_s1 + $0x7d4] sm:$0xf]  ;;  %v3748_v16 = vld [vmem:[%s6456_s1 + $0x7e4] sm:$0xf0]  ;;  %v3591_v21 = vor.u32 %v4242_v12, %v3588_v14  ;;  %v3408_v24 = vld [vmem:[%s6456_s1 + $0x53c] sm:$0xf0] }
  0x70   :  { %2294 = vmatpush.bf16.msrb.mxu0 %v3471_v56  ;;  %v4322_v18 = vld [vmem:[%s6456_s1 + $0x914] sm:$0xf]  ;;  %v3908_v19 = vld [vmem:[%s6456_s1 + $0x924] sm:$0xf0]  ;;  %v3751_v22 = vor.u32 %v4282_v15, %v3748_v16  ;;  %v4237_v25 = vld [vmem:[%s6456_s1 + $0x66c] sm:$0xf]  ;;  %v3411_v32 = vor.u32 %v4197_v23, %v3408_v24 }
  0x71   :  { %2308 = vmatpush.bf16.msrb.mxu1 %v3631_v57  ;;  %v3911_v26 = vor.u32 %v4322_v18, %v3908_v19  ;;  %v3568_v27 = vld [vmem:[%s6456_s1 + $0x67c] sm:$0xf0]  ;;  %v4277_v28 = vld [vmem:[%s6456_s1 + $0x7ac] sm:$0xf]  ;;  %v4192_v33 = vld [vmem:[%s6456_s1 + $0x504] sm:$0xf] }
  0x72   :  { %2322 = vmatpush.bf16.msrb.mxu2 %v3791_v59  ;;  %v3728_v29 = vld [vmem:[%s6456_s1 + $0x7bc] sm:$0xf0]  ;;  %v4317_v30 = vld [vmem:[%s6456_s1 + $0x8ec] sm:$0xf]  ;;  %v3388_v34 = vld [vmem:[%s6456_s1 + $0x514] sm:$0xf0]  ;;  %v3571_v35 = vor.u32 %v4237_v25, %v3568_v27 }
  0x73   :  { %2336 = vmatpush.bf16.msrb.mxu3 %v3951_v63  ;;  %v3888_v31 = vld [vmem:[%s6456_s1 + $0x8fc] sm:$0xf0]  ;;  %v3731_v36 = vor.u32 %v4277_v28, %v3728_v29  ;;  %v4232_v37 = vld [vmem:[%s6456_s1 + $0x644] sm:$0xf]  ;;  %v3548_v38 = vld [vmem:[%s6456_s1 + $0x654] sm:$0xf0]  ;;  %v3391_v51 = vor.u32 %v4192_v33, %v3388_v34 }
  0x74   :  { %2295 = vmatpush.bf16.msrb.mxu0 %v3451_v6  ;;  %v4272_v40 = vld [vmem:[%s6456_s1 + $0x784] sm:$0xf]  ;;  %v3891_v41 = vor.u32 %v4317_v30, %v3888_v31  ;;  %v3708_v42 = vld [vmem:[%s6456_s1 + $0x794] sm:$0xf0]  ;;  %v2894_v48 = vld [vmem:[%s6456_s1 + $0x120] sm:$0xf]  ;;  %v3551_v55 = vor.u32 %v4232_v37, %v3548_v38 }
  0x75   :  { %2309 = vmatpush.bf16.msrb.mxu1 %v3611_v7  ;;  %v4312_v45 = vld [vmem:[%s6456_s1 + $0x8c4] sm:$0xf]  ;;  %v3868_v46 = vld [vmem:[%s6456_s1 + $0x8d4] sm:$0xf0]  ;;  %v4070_v49 = vld [vmem:[%s6456_s1 + $0x130] sm:$0xf0]  ;;  %v3711_v56 = vor.u32 %v4272_v40, %v3708_v42 }
  0x76   :  { %2323 = vmatpush.bf16.msrb.mxu2 %v3771_v8  ;;  %v3054_v50 = vld [vmem:[%s6456_s1 + $0x260] sm:$0xf]  ;;  %v4110_v52 = vld [vmem:[%s6456_s1 + $0x270] sm:$0xf0]  ;;  %v3871_v60 = vor.u32 %v4312_v45, %v3868_v46  ;;  %v2895_v61 = vor.u32 %v4070_v49, %v2894_v48  ;;  %v2874_v0 = vld [vmem:[%s6456_s1 + $0xf8] sm:$0xf] }
  0x77   :  { %2337 = vmatpush.bf16.msrb.mxu3 %v3931_v13  ;;  %v3214_v53 = vld [vmem:[%s6456_s1 + $0x3a0] sm:$0xf]  ;;  %v4150_v54 = vld [vmem:[%s6456_s1 + $0x3b0] sm:$0xf0]  ;;  %v3055_v62 = vor.u32 %v4110_v52, %v3054_v50  ;;  %v4065_v2 = vld [vmem:[%s6456_s1 + $0x108] sm:$0xf0] }
  0x78   :  { %2296 = vmatpush.bf16.msrb.mxu0 %v3431_v20  ;;  %v3374_v57 = vld [vmem:[%s6456_s1 + $0x4e0] sm:$0xf]  ;;  %v4190_v59 = vld [vmem:[%s6456_s1 + $0x4f0] sm:$0xf0]  ;;  %v3215_v63 = vor.u32 %v4150_v54, %v3214_v53  ;;  %v3034_v3 = vld [vmem:[%s6456_s1 + $0x238] sm:$0xf]  ;;  %v2875_v11 = vor.u32 %v4065_v2, %v2874_v0 }
  0x79   :  { %2310 = vmatpush.bf16.msrb.mxu1 %v3591_v21  ;;  %v3375_v4 = vor.u32 %v4190_v59, %v3374_v57  ;;  %v4105_v5 = vld [vmem:[%s6456_s1 + $0x248] sm:$0xf0]  ;;  %v3194_v6 = vld [vmem:[%s6456_s1 + $0x378] sm:$0xf]  ;;  %v2854_v14 = vld [vmem:[%s6456_s1 + $0xd0] sm:$0xf] }
  0x7a   :  { %2324 = vmatpush.bf16.msrb.mxu2 %v3751_v22  ;;  %v4145_v7 = vld [vmem:[%s6456_s1 + $0x388] sm:$0xf0]  ;;  %v3354_v8 = vld [vmem:[%s6456_s1 + $0x4b8] sm:$0xf]  ;;  %v3035_v12 = vor.u32 %v4105_v5, %v3034_v3  ;;  %v4060_v15 = vld [vmem:[%s6456_s1 + $0xe0] sm:$0xf0] }
  0x7b   :  { %2338 = vmatpush.bf16.msrb.mxu3 %v3911_v26  ;;  %v4185_v9 = vld [vmem:[%s6456_s1 + $0x4c8] sm:$0xf0]  ;;  %v3195_v13 = vor.u32 %v4145_v7, %v3194_v6  ;;  %v3014_v16 = vld [vmem:[%s6456_s1 + $0x210] sm:$0xf]  ;;  %v4100_v19 = vld [vmem:[%s6456_s1 + $0x220] sm:$0xf0]  ;;  %v2855_v24 = vor.u32 %v4060_v15, %v2854_v14 }
  0x7c   :  { %2297 = vmatpush.bf16.msrb.mxu0 %v3411_v32  ;;  %v3355_v18 = vor.u32 %v4185_v9, %v3354_v8  ;;  %v3174_v20 = vld [vmem:[%s6456_s1 + $0x350] sm:$0xf]  ;;  %v4140_v21 = vld [vmem:[%s6456_s1 + $0x360] sm:$0xf0]  ;;  %v3015_v25 = vor.u32 %v4100_v19, %v3014_v16  ;;  %v2834_v27 = vld [vmem:[%s6456_s1 + $0xa8] sm:$0xf] }
  0x7d   :  { %2311 = vmatpush.bf16.msrb.mxu1 %v3571_v35  ;;  %v3334_v22 = vld [vmem:[%s6456_s1 + $0x490] sm:$0xf]  ;;  %v4180_v23 = vld [vmem:[%s6456_s1 + $0x4a0] sm:$0xf0]  ;;  %v3175_v26 = vor.u32 %v4140_v21, %v3174_v20  ;;  %v4055_v28 = vld [vmem:[%s6456_s1 + $0xb8] sm:$0xf0] }
  0x7e   :  { %2325 = vmatpush.bf16.msrb.mxu2 %v3731_v36  ;;  %v2994_v29 = vld [vmem:[%s6456_s1 + $0x1e8] sm:$0xf]  ;;  %v3335_v30 = vor.u32 %v4180_v23, %v3334_v22  ;;  %v4095_v31 = vld [vmem:[%s6456_s1 + $0x1f8] sm:$0xf0]  ;;  %v2835_v36 = vor.u32 %v4055_v28, %v2834_v27  ;;  %v2814_v40 = vld [vmem:[%s6456_s1 + $0x80] sm:$0xf] }
  0x7f   :  { %2339 = vmatpush.bf16.msrb.mxu3 %v3891_v41  ;;  %v3154_v32 = vld [vmem:[%s6456_s1 + $0x328] sm:$0xf]  ;;  %v4135_v33 = vld [vmem:[%s6456_s1 + $0x338] sm:$0xf0]  ;;  %v2995_v37 = vor.u32 %v4095_v31, %v2994_v29  ;;  %v4050_v41 = vld [vmem:[%s6456_s1 + $0x90] sm:$0xf0] }
  0x80   :  { %2298 = vmatpush.bf16.msrb.mxu0 %v3391_v51  ;;  %v3314_v34 = vld [vmem:[%s6456_s1 + $0x468] sm:$0xf]  ;;  %v4175_v35 = vld [vmem:[%s6456_s1 + $0x478] sm:$0xf0]  ;;  %v3155_v38 = vor.u32 %v4135_v33, %v3154_v32  ;;  %v2974_v42 = vld [vmem:[%s6456_s1 + $0x1c0] sm:$0xf]  ;;  %v2815_v52 = vor.u32 %v4050_v41, %v2814_v40 }
  0x81   :  { %2312 = vmatpush.bf16.msrb.mxu1 %v3551_v55  ;;  %v3315_v45 = vor.u32 %v4175_v35, %v3314_v34  ;;  %v4090_v46 = vld [vmem:[%s6456_s1 + $0x1d0] sm:$0xf0]  ;;  %v3134_v48 = vld [vmem:[%s6456_s1 + $0x300] sm:$0xf]  ;;  %v2794_v55 = vld [vmem:[%s6456_s1 + $0x58] sm:$0xf] }
  0x82   :  { %2326 = vmatpush.bf16.msrb.mxu2 %v3711_v56  ;;  %v4130_v49 = vld [vmem:[%s6456_s1 + $0x310] sm:$0xf0]  ;;  %v3294_v50 = vld [vmem:[%s6456_s1 + $0x440] sm:$0xf]  ;;  %v2975_v53 = vor.u32 %v4090_v46, %v2974_v42  ;;  %v4045_v56 = vld [vmem:[%s6456_s1 + $0x68] sm:$0xf0] }
  0x83   :  { %2340 = vmatpush.bf16.msrb.mxu3 %v3871_v60  ;;  %2299 = vmatmul.bf16.vlgmr.msrb.gmra.mxu0 %v4882_v39  ;;  %v4170_v51 = vld [vmem:[%s6456_s1 + $0x450] sm:$0xf0]  ;;  %v3135_v54 = vor.u32 %v4130_v49, %v3134_v48  ;;  %v2954_v57 = vld [vmem:[%s6456_s1 + $0x198] sm:$0xf]  ;;  %v4085_v60 = vld [vmem:[%s6456_s1 + $0x1a8] sm:$0xf0]  ;;  %v2795_v2 = vor.u32 %v4045_v56, %v2794_v55 }
  0x84   :  { %2347 = vmatpush.bf16.msra.mxu0 %v2895_v61  ;;  %2313 = vmatmul.bf16.vlgmr.msrb.gmra.mxu1 %v4895_v44  ;;  %v3295_v59 = vor.u32 %v4170_v51, %v3294_v50  ;;  %v3114_v61 = vld [vmem:[%s6456_s1 + $0x2d8] sm:$0xf]  ;;  %v4165_v0 = vld [vmem:[%s6456_s1 + $0x428] sm:$0xf0]  ;;  %v2955_v3 = vor.u32 %v4085_v60, %v2954_v57  ;;  %v2774_v5 = vld [vmem:[%s6456_s1 + $0x30] sm:$0xf] }
  0x85   :  { %2361 = vmatpush.bf16.msra.mxu1 %v3055_v62  ;;  %2327 = vmatmul.bf16.vlgmr.msrb.gmra.mxu2 %v4893_v43  ;;  %v4125_v62 = vld [vmem:[%s6456_s1 + $0x2e8] sm:$0xf0]  ;;  %v4040_v6 = vld [vmem:[%s6456_s1 + $0x40] sm:$0xf0]  ;;  %v2934_v7 = vld [vmem:[%s6456_s1 + $0x170] sm:$0xf] }
  0x86   :  { %2375 = vmatpush.bf16.msra.mxu2 %v3215_v63  ;;  %2341 = vmatmul.bf16.vlgmr.msrb.gmra.mxu3 %v4903_v47  ;;  %v3274_v63 = vld [vmem:[%s6456_s1 + $0x418] sm:$0xf]  ;;  %v4080_v9 = vld [vmem:[%s6456_s1 + $0x180] sm:$0xf0]  ;;  %v2775_v15 = vor.u32 %v4040_v6, %v2774_v5  ;;  %v2754_v16 = vld [vmem:[%s6456_s1 + $0x8] sm:$0xf] }
  0x87   :  { %2389 = vmatpush.bf16.msra.mxu3 %v3375_v4  ;;  %v3115_v4 = vor.u32 %v4125_v62, %v3114_v61  ;;  %v3275_v8 = vor.u32 %v4165_v0, %v3274_v63  ;;  %v4160_v14 = vld [vmem:[%s6456_s1 + $0x400] sm:$0xf0]  ;;  %v2935_v19 = vor.u32 %v4080_v9, %v2934_v7  ;;  %v2914_v21 = vld [vmem:[%s6456_s1 + $0x148] sm:$0xf]  ;;  %v4075_v22 = vld [vmem:[%s6456_s1 + $0x158] sm:$0xf0] }
  0x88   :  { %2348 = vmatpush.bf16.msra.mxu0 %v2875_v11  ;;  %v3094_v11 = vld [vmem:[%s6456_s1 + $0x2b0] sm:$0xf]  ;;  %v3074_v23 = vld [vmem:[%s6456_s1 + $0x288] sm:$0xf]  ;;  %v4155_v27 = vld [vmem:[%s6456_s1 + $0x3d8] sm:$0xf0]  ;;  %v2915_v35 = vor.u32 %v4075_v22, %v2914_v21 }
  0x89   :  { %2362 = vmatpush.bf16.msra.mxu1 %v3035_v12  ;;  %v4120_v12 = vld [vmem:[%s6456_s1 + $0x2c0] sm:$0xf0]  ;;  %v3534_v28 = vld [vmem:[%s6456_s1 + $0x620] sm:$0xf]  ;;  %v4230_v29 = vld [vmem:[%s6456_s1 + $0x630] sm:$0xf0] }
  0x8a   :  { %2376 = vmatpush.bf16.msra.mxu2 %v3195_v13  ;;  %v3254_v13 = vld [vmem:[%s6456_s1 + $0x3f0] sm:$0xf]  ;;  %v3095_v20 = vor.u32 %v4120_v12, %v3094_v11  ;;  %v4270_v32 = vld [vmem:[%s6456_s1 + $0x770] sm:$0xf0]  ;;  %v3854_v33 = vld [vmem:[%s6456_s1 + $0x8a0] sm:$0xf]  ;;  %v3535_v41 = vor.u32 %v4230_v29, %v3534_v28 }
  0x8b   :  { %2390 = vmatpush.bf16.msra.mxu3 %v3355_v18  ;;  %v4035_v18 = vld [vmem:[%s6456_s1 + $0x18] sm:$0xf0]  ;;  %v4310_v34 = vld [vmem:[%s6456_s1 + $0x8b0] sm:$0xf0]  ;;  %v3514_v46 = vld [vmem:[%s6456_s1 + $0x5f8] sm:$0xf] }
  0x8c   :  { %2349 = vmatpush.bf16.msra.mxu0 %v2855_v24  ;;  %v3255_v24 = vor.u32 %v4160_v14, %v3254_v13  ;;  %v2755_v31 = vor.u32 %v4035_v18, %v2754_v16  ;;  %v4225_v48 = vld [vmem:[%s6456_s1 + $0x608] sm:$0xf0]  ;;  %v3674_v49 = vld [vmem:[%s6456_s1 + $0x738] sm:$0xf]  ;;  %v3494_v60 = vld [vmem:[%s6456_s1 + $0x5d0] sm:$0xf] }
  0x8d   :  { %2363 = vmatpush.bf16.msra.mxu1 %v3015_v25  ;;  %v4115_v25 = vld [vmem:[%s6456_s1 + $0x298] sm:$0xf0]  ;;  %v4265_v51 = vld [vmem:[%s6456_s1 + $0x748] sm:$0xf0]  ;;  %v3515_v56 = vor.u32 %v4225_v48, %v3514_v46  ;;  %v4220_v61 = vld [vmem:[%s6456_s1 + $0x5e0] sm:$0xf0] }
  0x8e   :  { %2377 = vmatpush.bf16.msra.mxu2 %v3175_v26  ;;  %v3234_v26 = vld [vmem:[%s6456_s1 + $0x3c8] sm:$0xf]  ;;  %v4345_v55 = vld [vmem:[%s6456_s1 + $0x9c8] sm:$0xf0]  ;;  %v3675_v57 = vor.u32 %v4265_v51, %v3674_v49  ;;  %v3654_v62 = vld [vmem:[%s6456_s1 + $0x710] sm:$0xf]  ;;  %v3495_v6 = vor.u32 %v4220_v61, %v3494_v60 }
  0x8f   :  { %2391 = vmatpush.bf16.msra.mxu3 %v3335_v30  ;;  %v3694_v30 = vld [vmem:[%s6456_s1 + $0x760] sm:$0xf]  ;;  %v3235_v40 = vor.u32 %v4155_v27, %v3234_v26  ;;  %v4260_v0 = vld [vmem:[%s6456_s1 + $0x720] sm:$0xf0]  ;;  %v3474_v9 = vld [vmem:[%s6456_s1 + $0x5a8] sm:$0xf] }
  0x90   :  { %2350 = vmatpush.bf16.msra.mxu0 %v2835_v36  ;;  %v3075_v36 = vor.u32 %v4115_v25, %v3074_v23  ;;  %v3695_v42 = vor.u32 %v4270_v32, %v3694_v30  ;;  %v4340_v5 = vld [vmem:[%s6456_s1 + $0x9a0] sm:$0xf0]  ;;  %v3655_v7 = vor.u32 %v4260_v0, %v3654_v62  ;;  %v4215_v11 = vld [vmem:[%s6456_s1 + $0x5b8] sm:$0xf0]  ;;  %v3634_v12 = vld [vmem:[%s6456_s1 + $0x6e8] sm:$0xf] }
  0x91   :  { %2364 = vmatpush.bf16.msra.mxu1 %v2995_v37  ;;  %v4014_v37 = vld [vmem:[%s6456_s1 + $0x9e0] sm:$0xf]  ;;  %v4255_v14 = vld [vmem:[%s6456_s1 + $0x6f8] sm:$0xf0]  ;;  %v3954_v18 = vld [vmem:[%s6456_s1 + $0x968] sm:$0xf] }
  0x92   :  { %2378 = vmatpush.bf16.msra.mxu2 %v3155_v38  ;;  %v4350_v38 = vld [vmem:[%s6456_s1 + $0x9f0] sm:$0xf0]  ;;  %v4295_v16 = vld [vmem:[%s6456_s1 + $0x838] sm:$0xf0]  ;;  %v3635_v21 = vor.u32 %v4255_v14, %v3634_v12  ;;  %v3454_v23 = vld [vmem:[%s6456_s1 + $0x580] sm:$0xf] }
  0x93   :  { %2392 = vmatpush.bf16.msra.mxu3 %v3315_v45  ;;  %v3855_v45 = vor.u32 %v4310_v34, %v3854_v33  ;;  %v4015_v50 = vor.u32 %v4350_v38, %v4014_v37  ;;  %v3614_v25 = vld [vmem:[%s6456_s1 + $0x6c0] sm:$0xf]  ;;  %v4250_v27 = vld [vmem:[%s6456_s1 + $0x6d0] sm:$0xf0]  ;;  %v3434_v33 = vld [vmem:[%s6456_s1 + $0x558] sm:$0xf] }
  0x94   :  { %2351 = vmatpush.bf16.msra.mxu0 %v2815_v52  ;;  %v3834_v52 = vld [vmem:[%s6456_s1 + $0x878] sm:$0xf]  ;;  %v3774_v28 = vld [vmem:[%s6456_s1 + $0x800] sm:$0xf]  ;;  %v4290_v29 = vld [vmem:[%s6456_s1 + $0x810] sm:$0xf0]  ;;  %v3615_v34 = vor.u32 %v4250_v27, %v3614_v25 }
  0x95   :  { %2365 = vmatpush.bf16.msra.mxu1 %v2975_v53  ;;  %v4305_v53 = vld [vmem:[%s6456_s1 + $0x888] sm:$0xf0]  ;;  %v3934_v30 = vld [vmem:[%s6456_s1 + $0x940] sm:$0xf]  ;;  %v3594_v37 = vld [vmem:[%s6456_s1 + $0x698] sm:$0xf] }
  0x96   :  { %2379 = vmatpush.bf16.msra.mxu2 %v3135_v54  ;;  %v3994_v54 = vld [vmem:[%s6456_s1 + $0x9b8] sm:$0xf]  ;;  %v4245_v38 = vld [vmem:[%s6456_s1 + $0x6a8] sm:$0xf0]  ;;  %v3734_v60 = vld [vmem:[%s6456_s1 + $0x7b0] sm:$0xf] }
  0x97   :  { %2393 = vmatpush.bf16.msra.mxu3 %v3295_v59  ;;  %v3835_v59 = vor.u32 %v4305_v53, %v3834_v52  ;;  %v3995_v63 = vor.u32 %v4345_v55, %v3994_v54  ;;  %v3914_v46 = vld [vmem:[%s6456_s1 + $0x918] sm:$0xf]  ;;  %v4325_v48 = vld [vmem:[%s6456_s1 + $0x928] sm:$0xf0]  ;;  %v3595_v51 = vor.u32 %v4245_v38, %v3594_v37  ;;  %v4200_v55 = vld [vmem:[%s6456_s1 + $0x540] sm:$0xf0] }
  0x98   :  { %2352 = vmatpush.bf16.msra.mxu0 %v2795_v2  ;;  %v3814_v2 = vld [vmem:[%s6456_s1 + $0x850] sm:$0xf]  ;;  %v4280_v61 = vld [vmem:[%s6456_s1 + $0x7c0] sm:$0xf0]  ;;  %v3874_v14 = vld [vmem:[%s6456_s1 + $0x8c8] sm:$0xf] }
  0x99   :  { %2366 = vmatpush.bf16.msra.mxu1 %v2955_v3  ;;  %v4300_v3 = vld [vmem:[%s6456_s1 + $0x860] sm:$0xf0]  ;;  %v2876_v37 = vld [vmem:[%s6456_s1 + $0x10c] sm:$0xf0]  ;;  %v4103_v38 = vld [vmem:[%s6456_s1 + $0x23c] sm:$0xf] }
  0x9a   :  { %2380 = vmatpush.bf16.msra.mxu2 %v3115_v4  ;;  %v3974_v4 = vld [vmem:[%s6456_s1 + $0x990] sm:$0xf]  ;;  %v4320_v0 = vld [vmem:[%s6456_s1 + $0x900] sm:$0xf0]  ;;  %vm2687_vm0 = vcmask 523264   ;;  %s4383_s25 = smov 640  }
  0x9b   :  { %2394 = vmatpush.bf16.msra.mxu3 %v3275_v8  ;;  %v3815_v8 = vor.u32 %v4300_v3, %v3814_v2  ;;  %v3975_v13 = vor.u32 %v4340_v5, %v3974_v4  ;;  %v3394_v3 = vld [vmem:[%s6456_s1 + $0x508] sm:$0xf]  ;;  %v4195_v4 = vld [vmem:[%s6456_s1 + $0x518] sm:$0xf0]  ;;  %v4188_v27 = vld [vmem:[%s6456_s1 + $0x4e4] sm:$0xf] }
  0x9c   :  { %2353 = vmatpush.bf16.msra.mxu0 %v2775_v15  ;;  %v3794_v15 = vld [vmem:[%s6456_s1 + $0x828] sm:$0xf]  ;;  %s4384_s0 = smov 40  }
  0x9d   :  { %2367 = vmatpush.bf16.msra.mxu1 %v2935_v19  ;;  %v4335_v19 = vld [vmem:[%s6456_s1 + $0x978] sm:$0xf0]  ;;  %v3795_v22 = vor.u32 %v4295_v16, %v3794_v15  ;;  %v4068_v16 = vld [vmem:[%s6456_s1 + $0x124] sm:$0xf] }
  0x9e   :  { %2381 = vmatpush.bf16.msra.mxu2 %v3095_v20  ;;  %v3475_v20 = vor.u32 %v4215_v11, %v3474_v9  ;;  %v3955_v26 = vor.u32 %v4335_v19, %v3954_v18  ;;  %v3714_v9 = vld [vmem:[%s6456_s1 + $0x788] sm:$0xf]  ;;  %v4315_v15 = vld [vmem:[%s6456_s1 + $0x8d8] sm:$0xf0]  ;;  %v2896_v18 = vld [vmem:[%s6456_s1 + $0x134] sm:$0xf0] }
  0x9f   :  { %2395 = vmatpush.bf16.msra.mxu3 %v3255_v24  ;;  %v4210_v24 = vld [vmem:[%s6456_s1 + $0x590] sm:$0xf0]  ;;  %v4108_v19 = vld [vmem:[%s6456_s1 + $0x264] sm:$0xf] }
  0xa0   :  { %2354 = vmatpush.bf16.msra.mxu0 %v2755_v31  ;;  %v4330_v31 = vld [vmem:[%s6456_s1 + $0x950] sm:$0xf0]  ;;  %v3455_v32 = vor.u32 %v4210_v24, %v3454_v23  ;;  %v2132_v54 = vpop.f32.mrf.mxu0  ;;  %v3216_v23 = vld [vmem:[%s6456_s1 + $0x3b4] sm:$0xf0] }
  0xa1   :  { %2368 = vmatpush.bf16.msra.mxu1 %v2915_v35  ;;  %v3775_v35 = vor.u32 %v4290_v29, %v3774_v28  ;;  %v2146_v62 = vpop.f32.mrf.mxu1  ;;  %v3376_v28 = vld [vmem:[%s6456_s1 + $0x4f4] sm:$0xf0] }
  0xa2   :  { %2382 = vmatpush.bf16.msra.mxu2 %v3075_v36  ;;  %v4205_v36 = vld [vmem:[%s6456_s1 + $0x568] sm:$0xf0] }
  0xa3   :  { %2396 = vmatpush.bf16.msra.mxu3 %v3235_v40  ;;  %2355 = vmatmul.bf16.vlgmr.msra.gmra.mxu0 %v4660_v58  ;;  %v3935_v40 = vor.u32 %v4330_v31, %v3934_v30  ;;  %v3435_v49 = vor.u32 %v4205_v36, %v3434_v33  ;;  %v3875_v31 = vor.u32 %v4315_v15, %v3874_v14  ;;  %v4063_v36 = vld [vmem:[%s6456_s1 + $0xfc] sm:$0xf]  ;;  %v2996_v15 = vld [vmem:[%s6456_s1 + $0x1fc] sm:$0xf0] }
  0xa4   :  { %2403 = vmatpush.bf16.msrb.mxu0 %v3535_v41  ;;  %2369 = vmatmul.bf16.vlgmr.msra.gmra.mxu1 %v4696_v10  ;;  %v3754_v41 = vld [vmem:[%s6456_s1 + $0x7d8] sm:$0xf] }
  0xa5   :  { %2417 = vmatpush.bf16.msrb.mxu1 %v3695_v42  ;;  %2383 = vmatmul.bf16.vlgmr.msra.gmra.mxu2 %v4674_v1  ;;  %v4285_v42 = vld [vmem:[%s6456_s1 + $0x7e8] sm:$0xf0] }
  0xa6   :  { %2431 = vmatpush.bf16.msrb.mxu2 %v3855_v45  ;;  %2397 = vmatmul.bf16.vlgmr.msra.gmra.mxu3 %v4710_v17  ;;  %v5590_v45 = vld [vmem:[%s6457_s2] sm:$0x1f]  ;;  %v3755_v52 = vor.u32 %v4285_v42, %v3754_v41  ;;  %v3036_v41 = vld [vmem:[%s6456_s1 + $0x24c] sm:$0xf0]  ;;  %v4143_v42 = vld [vmem:[%s6456_s1 + $0x37c] sm:$0xf] }
  0xa7   :  { %2445 = vmatpush.bf16.msrb.mxu3 %v4015_v50  ;;  %v3414_v50 = vld [vmem:[%s6456_s1 + $0x530] sm:$0xf]  ;;  %v409_v53 = vperm.slane %v5590_v45, 0 }
  0xa8   :  { %2404 = vmatpush.bf16.msrb.mxu0 %v3515_v56  ;;  %v3574_v56 = vld [vmem:[%s6456_s1 + $0x670] sm:$0xf]  ;;  %v3415_v2 = vor.u32 %v4200_v55, %v3414_v50  ;;  %v2160_v24 = vpop.f32.mrf.mxu2  ;;  %v3039_v55 = vor.u32 %v4103_v38, %v3036_v41 }
  0xa9   :  { %2418 = vmatpush.bf16.msrb.mxu1 %v3675_v57  ;;  %v3915_v57 = vor.u32 %v4325_v48, %v3914_v46  ;;  %v2133_v11 = vadd.f32 %v2132_v54, %v409_v53  ;;  %v2174_v29 = vpop.f32.mrf.mxu3  ;;  %v3196_v46 = vld [vmem:[%s6456_s1 + $0x38c] sm:$0xf0]  ;;  %v2148_v48 = vpop.f32.mrf.mxu1 }
  0xaa   :  { %2432 = vmatpush.bf16.msrb.mxu2 %v3835_v59  ;;  %v4240_v59 = vld [vmem:[%s6456_s1 + $0x680] sm:$0xf0]  ;;  %v3356_v50 = vld [vmem:[%s6456_s1 + $0x4cc] sm:$0xf0] }
  0xab   :  { %2446 = vmatpush.bf16.msrb.mxu3 %v3995_v63  ;;  %v3894_v63 = vld [vmem:[%s6456_s1 + $0x8f0] sm:$0xf]  ;;  %v3575_v5 = vor.u32 %v4240_v59, %v3574_v56  ;;  %v2147_v30 = vadd.f32 %v2146_v62, %v2133_v11  ;;  %v3199_v56 = vor.u32 %v4143_v42, %v3196_v46  ;;  %v2856_v59 = vld [vmem:[%s6456_s1 + $0xe4] sm:$0xf0]  ;;  %v4138_v62 = vld [vmem:[%s6456_s1 + $0x354] sm:$0xf] }
  0xac   :  { %2405 = vmatpush.bf16.msrb.mxu0 %v3495_v6  ;;  %v3735_v6 = vor.u32 %v4280_v61, %v3734_v60  ;;  %v3895_v12 = vor.u32 %v4320_v0, %v3894_v63  ;;  %v4098_v60 = vld [vmem:[%s6456_s1 + $0x214] sm:$0xf]  ;;  %v3176_v63 = vld [vmem:[%s6456_s1 + $0x364] sm:$0xf0]  ;;  %v4053_v11 = vld [vmem:[%s6456_s1 + $0xac] sm:$0xf] }
  0xad   :  { %2419 = vmatpush.bf16.msrb.mxu1 %v3655_v7  ;;  %v3554_v7 = vld [vmem:[%s6456_s1 + $0x648] sm:$0xf]  ;;  %v4178_v0 = vld [vmem:[%s6456_s1 + $0x494] sm:$0xf] }
  0xae   :  { %2433 = vmatpush.bf16.msrb.mxu2 %v3815_v8  ;;  %v4235_v8 = vld [vmem:[%s6456_s1 + $0x658] sm:$0xf0] }
  0xaf   :  { %2447 = vmatpush.bf16.msrb.mxu3 %v3975_v13  ;;  %v4275_v13 = vld [vmem:[%s6456_s1 + $0x798] sm:$0xf0]  ;;  %v3555_v25 = vor.u32 %v4235_v8, %v3554_v7  ;;  %v3179_v8 = vor.u32 %v4138_v62, %v3176_v63 }
  0xb0   :  { %2406 = vmatpush.bf16.msrb.mxu0 %v3475_v20  ;;  %v3395_v20 = vor.u32 %v4195_v4, %v3394_v3 }
  0xb1   :  { %2420 = vmatpush.bf16.msrb.mxu1 %v3635_v21  ;;  %v3056_v21 = vld [vmem:[%s6456_s1 + $0x274] sm:$0xf0] }
  0xb2   :  { %2434 = vmatpush.bf16.msrb.mxu2 %v3795_v22  ;;  %v4148_v22 = vld [vmem:[%s6456_s1 + $0x3a4] sm:$0xf]  ;;  %v3059_v33 = vor.u32 %v4108_v19, %v3056_v21  ;;  %v3316_v21 = vld [vmem:[%s6456_s1 + $0x47c] sm:$0xf0] }
  0xb3   :  { %2448 = vmatpush.bf16.msrb.mxu3 %v3955_v26  ;;  %v3715_v26 = vor.u32 %v4275_v13, %v3714_v9  ;;  %v2176_v9 = vpop.f32.mrf.mxu3  ;;  %v4093_v13 = vld [vmem:[%s6456_s1 + $0x1ec] sm:$0xf] }
  0xb4   :  { %2407 = vmatpush.bf16.msrb.mxu0 %v3455_v32  ;;  %v2899_v32 = vor.u32 %v4068_v16, %v2896_v18  ;;  %v4133_v16 = vld [vmem:[%s6456_s1 + $0x32c] sm:$0xf]  ;;  %v3156_v18 = vld [vmem:[%s6456_s1 + $0x33c] sm:$0xf0] }
  0xb5   :  { %2421 = vmatpush.bf16.msrb.mxu1 %v3615_v34  ;;  %v3219_v34 = vor.u32 %v4148_v22, %v3216_v23 }
  0xb6   :  { %2435 = vmatpush.bf16.msrb.mxu2 %v3775_v35  ;;  %v2134_v35 = vpop.f32.mrf.mxu0 }
  0xb7   :  { %2449 = vmatpush.bf16.msrb.mxu3 %v3935_v40  ;;  %v3379_v40 = vor.u32 %v4188_v27, %v3376_v28  ;;  %v2135_v54 = vadd.f32 %v2134_v35, %v409_v53  ;;  %v3016_v53 = vld [vmem:[%s6456_s1 + $0x224] sm:$0xf0]  ;;  %v3159_v27 = vor.u32 %v4133_v16, %v3156_v18  ;;  %v4048_v28 = vld [vmem:[%s6456_s1 + $0x84] sm:$0xf]  ;;  %v2756_v16 = vld [vmem:[%s6456_s1 + $0x1c] sm:$0xf0] }
  0xb8   :  { %2408 = vmatpush.bf16.msrb.mxu0 %v3435_v49  ;;  %v4183_v49 = vld [vmem:[%s6456_s1 + $0x4bc] sm:$0xf]  ;;  %v3019_v7 = vor.u32 %v4098_v60, %v3016_v53 }
  0xb9   :  { %2422 = vmatpush.bf16.msrb.mxu1 %v3595_v51  ;;  %v2161_v51 = vadd.f32 %v2160_v24, %v2147_v30  ;;  %v3359_v61 = vor.u32 %v4183_v49, %v3356_v50  ;;  %v4088_v30 = vld [vmem:[%s6456_s1 + $0x1c4] sm:$0xf]  ;;  %v4083_v49 = vld [vmem:[%s6456_s1 + $0x19c] sm:$0xf]  ;;  %v2956_v50 = vld [vmem:[%s6456_s1 + $0x1ac] sm:$0xf0] }
  0xba   :  { %2436 = vmatpush.bf16.msrb.mxu2 %v3755_v52  ;;  %v2879_v52 = vor.u32 %v4063_v36, %v2876_v37  ;;  %v4168_v36 = vld [vmem:[%s6456_s1 + $0x444] sm:$0xf]  ;;  %v3296_v37 = vld [vmem:[%s6456_s1 + $0x454] sm:$0xf0]  ;;  %v4163_v60 = vld [vmem:[%s6456_s1 + $0x41c] sm:$0xf]  ;;  %v2959_v62 = vor.u32 %v4083_v49, %v2956_v50 }
  0xbb   :  { %2450 = vmatpush.bf16.msrb.mxu3 %v3915_v57  ;;  %v4058_v57 = vld [vmem:[%s6456_s1 + $0xd4] sm:$0xf]  ;;  %v2175_v3 = vadd.f32 %v2174_v29, %v2161_v51  ;;  %v2816_v29 = vld [vmem:[%s6456_s1 + $0x94] sm:$0xf0]  ;;  %v3299_v51 = vor.u32 %v4168_v36, %v3296_v37  ;;  %v4308_v36 = vld [vmem:[%s6456_s1 + $0x8a4] sm:$0xf] }
  0xbc   :  { %2409 = vmatpush.bf16.msrb.mxu0 %v3415_v2  ;;  %v3336_v2 = vld [vmem:[%s6456_s1 + $0x4a4] sm:$0xf0]  ;;  %v2859_v4 = vor.u32 %v4058_v57, %v2856_v59  ;;  %v2819_v38 = vor.u32 %v4048_v28, %v2816_v29  ;;  %v3236_v28 = vld [vmem:[%s6456_s1 + $0x3dc] sm:$0xf0]  ;;  %v3856_v37 = vld [vmem:[%s6456_s1 + $0x8b4] sm:$0xf0] }
  0xbd   :  { %2423 = vmatpush.bf16.msrb.mxu1 %v3575_v5  ;;  %v2162_v5 = vpop.f32.mrf.mxu2  ;;  %v3339_v14 = vor.u32 %v4178_v0, %v3336_v2  ;;  %v4223_v50 = vld [vmem:[%s6456_s1 + $0x5fc] sm:$0xf] }
  0xbe   :  { %2437 = vmatpush.bf16.msrb.mxu2 %v3735_v6  ;;  %v2149_v6 = vadd.f32 %v2148_v48, %v2135_v54  ;;  %v2796_v48 = vld [vmem:[%s6456_s1 + $0x6c] sm:$0xf0]  ;;  %v4123_v54 = vld [vmem:[%s6456_s1 + $0x2dc] sm:$0xf] }
  0xbf   :  { %2451 = vmatpush.bf16.msrb.mxu3 %v3895_v12  ;;  %v2836_v12 = vld [vmem:[%s6456_s1 + $0xbc] sm:$0xf0] }
  0xc0   :  { %2410 = vmatpush.bf16.msrb.mxu0 %v3395_v20  ;;  %v2188_v19 = vpop.f32.mrf.mxu0  ;;  %v4173_v20 = vld [vmem:[%s6456_s1 + $0x46c] sm:$0xf]  ;;  %v2839_v23 = vor.u32 %v4053_v11, %v2836_v12  ;;  %v3096_v11 = vld [vmem:[%s6456_s1 + $0x2c4] sm:$0xf0]  ;;  %v4158_v12 = vld [vmem:[%s6456_s1 + $0x3f4] sm:$0xf] }
  0xc1   :  { %2424 = vmatpush.bf16.msrb.mxu1 %v3555_v25  ;;  %v2189_v22 = vadd.f32 %v2188_v19, %v2175_v3  ;;  %v2202_v24 = vpop.f32.mrf.mxu1  ;;  %v2163_v25 = vadd.f32 %v2162_v5, %v2149_v6  ;;  %v4038_v3 = vld [vmem:[%s6456_s1 + $0x34] sm:$0xf] }
  0xc2   :  { %2438 = vmatpush.bf16.msrb.mxu2 %v3715_v26  ;;  %v2999_v26 = vor.u32 %v4093_v13, %v2996_v15  ;;  %v4078_v5 = vld [vmem:[%s6456_s1 + $0x174] sm:$0xf]  ;;  %v3256_v13 = vld [vmem:[%s6456_s1 + $0x404] sm:$0xf0]  ;;  %v4033_v15 = vld [vmem:[%s6456_s1 + $0xc] sm:$0xf] }
  0xc3   :  { %2452 = vmatpush.bf16.msrb.mxu3 %v3875_v31  ;;  %2411 = vmatmul.bf16.vlgmr.msrb.gmra.mxu0 %v4882_v39  ;;  %v3319_v31 = vor.u32 %v4173_v20, %v3316_v21  ;;  %v2203_v35 = vadd.f32 %v2202_v24, %v2189_v22  ;;  %v2177_v41 = vadd.f32 %v2176_v9, %v2163_v25  ;;  %v4118_v9 = vld [vmem:[%s6456_s1 + $0x2b4] sm:$0xf]  ;;  %v4073_v21 = vld [vmem:[%s6456_s1 + $0x14c] sm:$0xf]  ;;  %v2916_v22 = vld [vmem:[%s6456_s1 + $0x15c] sm:$0xf0] }
  0xc4   :  { %2459 = vmatpush.bf16.msra.mxu0 %v2899_v32  ;;  %2425 = vmatmul.bf16.vlgmr.msrb.gmra.mxu1 %v4895_v44  ;;  %v2976_v32 = vld [vmem:[%s6456_s1 + $0x1d4] sm:$0xf0]  ;;  %v3099_v20 = vor.u32 %v4118_v9, %v3096_v11  ;;  %v3259_v24 = vor.u32 %v4158_v12, %v3256_v13  ;;  %v4338_v9 = vld [vmem:[%s6456_s1 + $0x994] sm:$0xf]  ;;  %v3976_v11 = vld [vmem:[%s6456_s1 + $0x9a4] sm:$0xf0] }
  0xc5   :  { %2473 = vmatpush.bf16.msra.mxu1 %v3059_v33  ;;  %2439 = vmatmul.bf16.vlgmr.msrb.gmra.mxu2 %v4893_v43  ;;  %v4128_v33 = vld [vmem:[%s6456_s1 + $0x304] sm:$0xf]  ;;  %v2979_v42 = vor.u32 %v4088_v30, %v2976_v32  ;;  %v3536_v32 = vld [vmem:[%s6456_s1 + $0x634] sm:$0xf0] }
  0xc6   :  { %2487 = vmatpush.bf16.msra.mxu2 %v3219_v34  ;;  %2453 = vmatmul.bf16.vlgmr.msrb.gmra.mxu3 %v4903_v47  ;;  %v3136_v34 = vld [vmem:[%s6456_s1 + $0x314] sm:$0xf0] }
  0xc7   :  { %2501 = vmatpush.bf16.msra.mxu3 %v3379_v40  ;;  %v4043_v40 = vld [vmem:[%s6456_s1 + $0x5c] sm:$0xf]  ;;  %v3139_v46 = vor.u32 %v4128_v33, %v3136_v34  ;;  %v4268_v33 = vld [vmem:[%s6456_s1 + $0x764] sm:$0xf]  ;;  %v2759_v34 = vor.u32 %v4033_v15, %v2756_v16  ;;  %v4213_v15 = vld [vmem:[%s6456_s1 + $0x5ac] sm:$0xf] }
  0xc8   :  { %2460 = vmatpush.bf16.msra.mxu0 %v2879_v52  ;;  %v2216_v52 = vpop.f32.mrf.mxu2  ;;  %v2190_v57 = vpop.f32.mrf.mxu0  ;;  %v2799_v53 = vor.u32 %v4043_v40, %v2796_v48  ;;  %v2919_v40 = vor.u32 %v4073_v21, %v2916_v22  ;;  %v3476_v16 = vld [vmem:[%s6456_s1 + $0x5bc] sm:$0xf0]  ;;  %v4293_v21 = vld [vmem:[%s6456_s1 + $0x82c] sm:$0xf] }
  0xc9   :  { %2474 = vmatpush.bf16.msra.mxu1 %v3039_v55  ;;  %v3116_v55 = vld [vmem:[%s6456_s1 + $0x2ec] sm:$0xf0]  ;;  %v2230_v59 = vpop.f32.mrf.mxu3  ;;  %v2191_v63 = vadd.f32 %v2190_v57, %v2177_v41  ;;  %v3796_v22 = vld [vmem:[%s6456_s1 + $0x83c] sm:$0xf0] }
  0xca   :  { %2488 = vmatpush.bf16.msra.mxu2 %v3199_v56  ;;  %v2217_v56 = vadd.f32 %v2216_v52, %v2203_v35  ;;  %v3119_v2 = vor.u32 %v4123_v54, %v3116_v55  ;;  %v3696_v35 = vld [vmem:[%s6456_s1 + $0x774] sm:$0xf0]  ;;  %v3859_v52 = vor.u32 %v4308_v36, %v3856_v37  ;;  %v3516_v54 = vld [vmem:[%s6456_s1 + $0x60c] sm:$0xf0]  ;;  %v4263_v55 = vld [vmem:[%s6456_s1 + $0x73c] sm:$0xf] }
  0xcb   :  { %2502 = vmatpush.bf16.msra.mxu3 %v3359_v61  ;;  %v3276_v61 = vld [vmem:[%s6456_s1 + $0x42c] sm:$0xf0]  ;;  %v3936_v36 = vld [vmem:[%s6456_s1 + $0x954] sm:$0xf0] }
  0xcc   :  { %2461 = vmatpush.bf16.msra.mxu0 %v2859_v4  ;;  %v2231_v0 = vadd.f32 %v2230_v59, %v2217_v56  ;;  %v2776_v4 = vld [vmem:[%s6456_s1 + $0x44] sm:$0xf0]  ;;  %v3279_v6 = vor.u32 %v4163_v60, %v3276_v61  ;;  %v3676_v57 = vld [vmem:[%s6456_s1 + $0x74c] sm:$0xf0]  ;;  %v4303_v59 = vld [vmem:[%s6456_s1 + $0x87c] sm:$0xf] }
  0xcd   :  { %2475 = vmatpush.bf16.msra.mxu1 %v3019_v7  ;;  %v2204_v7 = vpop.f32.mrf.mxu1  ;;  %v3836_v60 = vld [vmem:[%s6456_s1 + $0x88c] sm:$0xf0]  ;;  %v4343_v61 = vld [vmem:[%s6456_s1 + $0x9bc] sm:$0xf] }
  0xce   :  { %2489 = vmatpush.bf16.msra.mxu2 %v3179_v8  ;;  %v2936_v8 = vld [vmem:[%s6456_s1 + $0x184] sm:$0xf0]  ;;  %2683 = vst [vmem:[#allocation2] sm:$0xff] %v2231_v0  ;;  %v2205_v18 = vadd.f32 %v2204_v7, %v2191_v63  ;;  %v3679_v63 = vor.u32 %v4263_v55, %v3676_v57  ;;  %v3839_v0 = vor.u32 %v4303_v59, %v3836_v60  ;;  %v4298_v7 = vld [vmem:[%s6456_s1 + $0x854] sm:$0xf] }
  0xcf   :  { %2503 = vmatpush.bf16.msra.mxu3 %v3339_v14  ;;  %v2779_v14 = vor.u32 %v4038_v3, %v2776_v4  ;;  %v2939_v19 = vor.u32 %v4078_v5, %v2936_v8  ;;  %v3496_v3 = vld [vmem:[%s6456_s1 + $0x5e4] sm:$0xf0]  ;;  %v4258_v4 = vld [vmem:[%s6456_s1 + $0x714] sm:$0xf] }
  0xd0   :  { %2462 = vmatpush.bf16.msra.mxu0 %v2839_v23  ;;  %v4113_v23 = vld [vmem:[%s6456_s1 + $0x28c] sm:$0xf]  ;;  %v2218_v25 = vpop.f32.mrf.mxu2  ;;  %v3816_v8 = vld [vmem:[%s6456_s1 + $0x864] sm:$0xf0] }
  0xd1   :  { %2476 = vmatpush.bf16.msra.mxu1 %v2999_v26  ;;  %v3076_v26 = vld [vmem:[%s6456_s1 + $0x29c] sm:$0xf0]  ;;  %v2219_v29 = vadd.f32 %v2218_v25, %v2205_v18  ;;  %v2232_v30 = vpop.f32.mrf.mxu3  ;;  %v4253_v18 = vld [vmem:[%s6456_s1 + $0x6ec] sm:$0xf]  ;;  %v3479_v25 = vor.u32 %v4213_v15, %v3476_v16 }
  0xd2   :  { %2490 = vmatpush.bf16.msra.mxu2 %v3159_v27  ;;  %v4153_v27 = vld [vmem:[%s6456_s1 + $0x3cc] sm:$0xf]  ;;  %v3079_v41 = vor.u32 %v4113_v23, %v3076_v26 }
  0xd3   :  { %2504 = vmatpush.bf16.msra.mxu3 %v3319_v31  ;;  %v4228_v31 = vld [vmem:[%s6456_s1 + $0x624] sm:$0xf]  ;;  %v3239_v48 = vor.u32 %v4153_v27, %v3236_v28  ;;  %v4333_v23 = vld [vmem:[%s6456_s1 + $0x96c] sm:$0xf]  ;;  %v3799_v27 = vor.u32 %v4293_v21, %v3796_v22  ;;  %v3876_v21 = vld [vmem:[%s6456_s1 + $0x8dc] sm:$0xf0] }
  0xd4   :  { %2463 = vmatpush.bf16.msra.mxu0 %v2819_v38  ;;  %v2233_v38 = vadd.f32 %v2232_v30, %v2219_v29  ;;  %v3539_v49 = vor.u32 %v4228_v31, %v3536_v32  ;;  %v4208_v28 = vld [vmem:[%s6456_s1 + $0x584] sm:$0xf]  ;;  %v3456_v29 = vld [vmem:[%s6456_s1 + $0x594] sm:$0xf0]  ;;  %v4273_v15 = vld [vmem:[%s6456_s1 + $0x78c] sm:$0xf] }
  0xd5   :  { %2477 = vmatpush.bf16.msra.mxu1 %v2979_v42  ;;  %v4348_v42 = vld [vmem:[%s6456_s1 + $0x9e4] sm:$0xf]  ;;  %v3616_v32 = vld [vmem:[%s6456_s1 + $0x6d4] sm:$0xf0]  ;;  %v3459_v37 = vor.u32 %v4208_v28, %v3456_v29  ;;  %v2902_v22 = vld [vmem:[%s6456_s1 + $0x128] sm:$0xf] }
  0xd6   :  { %2491 = vmatpush.bf16.msra.mxu2 %v3139_v46  ;;  %v4016_v46 = vld [vmem:[%s6456_s1 + $0x9f4] sm:$0xf0]  ;;  %2689 = vst [vmem:[#allocation2 + $0x28] sm:$0xff] %v2233_v38  ;;  %v4248_v30 = vld [vmem:[%s6456_s1 + $0x6c4] sm:$0xf] }
  0xd7   :  { %2505 = vmatpush.bf16.msra.mxu3 %v3299_v51  ;;  %v3699_v51 = vor.u32 %v4268_v33, %v3696_v35  ;;  %v4019_v56 = vor.u32 %v4348_v42, %v4016_v46  ;;  %v4288_v33 = vld [vmem:[%s6456_s1 + $0x804] sm:$0xf]  ;;  %v3619_v38 = vor.u32 %v4248_v30, %v3616_v32  ;;  %v3436_v42 = vld [vmem:[%s6456_s1 + $0x56c] sm:$0xf0]  ;;  %v4243_v46 = vld [vmem:[%s6456_s1 + $0x69c] sm:$0xf] }
  0xd8   :  { %2464 = vmatpush.bf16.msra.mxu0 %v2799_v53  ;;  %v3996_v53 = vld [vmem:[%s6456_s1 + $0x9cc] sm:$0xf0]  ;;  %v4328_v35 = vld [vmem:[%s6456_s1 + $0x944] sm:$0xf]  ;;  %v4151_v28 = vld [vmem:[%s6456_s1 + $0x3b8] sm:$0xf0] }
  0xd9   :  { %2478 = vmatpush.bf16.msra.mxu1 %v2959_v62  ;;  %v3519_v62 = vor.u32 %v4223_v50, %v3516_v54  ;;  %v3999_v5 = vor.u32 %v4343_v61, %v3996_v53  ;;  %v4283_v50 = vld [vmem:[%s6456_s1 + $0x7dc] sm:$0xf]  ;;  %v3916_v54 = vld [vmem:[%s6456_s1 + $0x92c] sm:$0xf0]  ;;  %v4198_v61 = vld [vmem:[%s6456_s1 + $0x534] sm:$0xf] }
  0xda   :  { %2492 = vmatpush.bf16.msra.mxu2 %v3119_v2  ;;  %v4218_v2 = vld [vmem:[%s6456_s1 + $0x5d4] sm:$0xf]  ;;  %v3416_v53 = vld [vmem:[%s6456_s1 + $0x544] sm:$0xf0] }
  0xdb   :  { %2506 = vmatpush.bf16.msra.mxu3 %v3279_v6  ;;  %v3656_v6 = vld [vmem:[%s6456_s1 + $0x724] sm:$0xf0]  ;;  %v3499_v12 = vor.u32 %v4218_v2, %v3496_v3  ;;  %v4278_v2 = vld [vmem:[%s6456_s1 + $0x7b4] sm:$0xf] }
  0xdc   :  { %2465 = vmatpush.bf16.msra.mxu0 %v2779_v14  ;;  %v3659_v13 = vor.u32 %v4258_v4, %v3656_v6  ;;  %v3819_v14 = vor.u32 %v4298_v7, %v3816_v8  ;;  %v3736_v3 = vld [vmem:[%s6456_s1 + $0x7c4] sm:$0xf0]  ;;  %v3419_v7 = vor.u32 %v4198_v61, %v3416_v53  ;;  %v4193_v8 = vld [vmem:[%s6456_s1 + $0x50c] sm:$0xf] }
  0xdd   :  { %2479 = vmatpush.bf16.msra.mxu1 %v2939_v19  ;;  %v3979_v19 = vor.u32 %v4338_v9, %v3976_v11  ;;  %v3896_v6 = vld [vmem:[%s6456_s1 + $0x904] sm:$0xf0]  ;;  %v3396_v9 = vld [vmem:[%s6456_s1 + $0x51c] sm:$0xf0] }
  0xde   :  { %2493 = vmatpush.bf16.msra.mxu2 %v3099_v20  ;;  %v3636_v20 = vld [vmem:[%s6456_s1 + $0x6fc] sm:$0xf0]  ;;  %v3382_v32 = vld [vmem:[%s6456_s1 + $0x4e8] sm:$0xf] }
  0xdf   :  { %2507 = vmatpush.bf16.msra.mxu3 %v3259_v24  ;;  %v3956_v24 = vld [vmem:[%s6456_s1 + $0x97c] sm:$0xf0]  ;;  %v3639_v26 = vor.u32 %v4253_v18, %v3636_v20  ;;  %v4313_v20 = vld [vmem:[%s6456_s1 + $0x8cc] sm:$0xf] }
  0xe0   :  { %2466 = vmatpush.bf16.msra.mxu0 %v2759_v34  ;;  %v3959_v31 = vor.u32 %v4333_v23, %v3956_v24  ;;  %v3776_v34 = vld [vmem:[%s6456_s1 + $0x814] sm:$0xf0]  ;;  %v4071_v23 = vld [vmem:[%s6456_s1 + $0x138] sm:$0xf0]  ;;  %v3062_v24 = vld [vmem:[%s6456_s1 + $0x268] sm:$0xf] }
  0xe1   :  { %2480 = vmatpush.bf16.msra.mxu1 %v2919_v40  ;;  %v3779_v40 = vor.u32 %v4288_v33, %v3776_v34  ;;  %v4191_v33 = vld [vmem:[%s6456_s1 + $0x4f8] sm:$0xf0] }
  0xe2   :  { %2494 = vmatpush.bf16.msra.mxu2 %v3079_v41  ;;  %v4203_v41 = vld [vmem:[%s6456_s1 + $0x55c] sm:$0xf]  ;;  %v2244_v60 = vpop.f32.mrf.mxu0 }
  0xe3   :  { %2508 = vmatpush.bf16.msra.mxu3 %v3239_v48  ;;  %2467 = vmatmul.bf16.vlgmr.msra.gmra.mxu0 %v4660_v58  ;;  %v3939_v48 = vor.u32 %v4328_v35, %v3936_v36  ;;  %v3439_v55 = vor.u32 %v4203_v41, %v3436_v42  ;;  %v2258_v4 = vpop.f32.mrf.mxu1  ;;  %v3879_v36 = vor.u32 %v4313_v20, %v3876_v21  ;;  %v2882_v42 = vld [vmem:[%s6456_s1 + $0x100] sm:$0xf]  ;;  %v4096_v20 = vld [vmem:[%s6456_s1 + $0x200] sm:$0xf0]  ;;  %v3162_v21 = vld [vmem:[%s6456_s1 + $0x330] sm:$0xf] }
  0xe4   :  { %2515 = vmatpush.bf16.msrb.mxu0 %v3539_v49  ;;  %2481 = vmatmul.bf16.vlgmr.msra.gmra.mxu1 %v4696_v10  ;;  %v3596_v49 = vld [vmem:[%s6456_s1 + $0x6ac] sm:$0xf0] }
  0xe5   :  { %2529 = vmatpush.bf16.msrb.mxu1 %v3699_v51  ;;  %2495 = vmatmul.bf16.vlgmr.msra.gmra.mxu2 %v4674_v1  ;;  %v3756_v51 = vld [vmem:[%s6456_s1 + $0x7ec] sm:$0xf0]  ;;  %v3599_v57 = vor.u32 %v4243_v46, %v3596_v49  ;;  %v4066_v46 = vld [vmem:[%s6456_s1 + $0x110] sm:$0xf0]  ;;  %v3383_v49 = vor.u32 %v4191_v33, %v3382_v32  ;;  %v2822_v32 = vld [vmem:[%s6456_s1 + $0x88] sm:$0xf] }
  0xe6   :  { %2543 = vmatpush.bf16.msrb.mxu2 %v3859_v52  ;;  %2509 = vmatmul.bf16.vlgmr.msra.gmra.mxu3 %v4710_v17  ;;  %v4323_v52 = vld [vmem:[%s6456_s1 + $0x91c] sm:$0xf]  ;;  %v3759_v59 = vor.u32 %v4283_v50, %v3756_v51  ;;  %v4106_v50 = vld [vmem:[%s6456_s1 + $0x250] sm:$0xf0]  ;;  %v3202_v51 = vld [vmem:[%s6456_s1 + $0x380] sm:$0xf] }
  0xe7   :  { %2557 = vmatpush.bf16.msrb.mxu3 %v4019_v56  ;;  %v410_v56 = vperm.slane %v5590_v45, 1  ;;  %v4101_v45 = vld [vmem:[%s6456_s1 + $0x228] sm:$0xf0]  ;;  %v4051_v33 = vld [vmem:[%s6456_s1 + $0x98] sm:$0xf0] }
  0xe8   :  { %2516 = vmatpush.bf16.msrb.mxu0 %v3519_v62  ;;  %v4238_v62 = vld [vmem:[%s6456_s1 + $0x674] sm:$0xf] }
  0xe9   :  { %2530 = vmatpush.bf16.msrb.mxu1 %v3679_v63  ;;  %v3919_v63 = vor.u32 %v4323_v52, %v3916_v54  ;;  %v2245_v16 = vadd.f32 %v2244_v60, %v410_v56  ;;  %v4146_v52 = vld [vmem:[%s6456_s1 + $0x390] sm:$0xf0]  ;;  %v2883_v60 = vor.u32 %v4066_v46, %v2882_v42  ;;  %v4171_v42 = vld [vmem:[%s6456_s1 + $0x458] sm:$0xf0]  ;;  %v2823_v46 = vor.u32 %v4051_v33, %v2822_v32 }
  0xea   :  { %2544 = vmatpush.bf16.msrb.mxu2 %v3839_v0  ;;  %v3576_v0 = vld [vmem:[%s6456_s1 + $0x684] sm:$0xf0]  ;;  %v2272_v29 = vpop.f32.mrf.mxu2  ;;  %v2246_v41 = vpop.f32.mrf.mxu0 }
  0xeb   :  { %2558 = vmatpush.bf16.msrb.mxu3 %v3999_v5  ;;  %v4318_v5 = vld [vmem:[%s6456_s1 + $0x8f4] sm:$0xf]  ;;  %v3579_v11 = vor.u32 %v4238_v62, %v3576_v0  ;;  %v2286_v34 = vpop.f32.mrf.mxu3  ;;  %v2259_v35 = vadd.f32 %v2258_v4, %v2245_v16  ;;  %v2260_v54 = vpop.f32.mrf.mxu1  ;;  %v2247_v61 = vadd.f32 %v2246_v41, %v410_v56  ;;  %v3203_v62 = vor.u32 %v4146_v52, %v3202_v51  ;;  %v4061_v0 = vld [vmem:[%s6456_s1 + $0xe8] sm:$0xf0]  ;;  %v3182_v56 = vld [vmem:[%s6456_s1 + $0x358] sm:$0xf] }
  0xec   :  { %2517 = vmatpush.bf16.msrb.mxu0 %v3499_v12  ;;  %v3739_v12 = vor.u32 %v4278_v2, %v3736_v3  ;;  %v3899_v18 = vor.u32 %v4318_v5, %v3896_v6  ;;  %v3022_v2 = vld [vmem:[%s6456_s1 + $0x218] sm:$0xf]  ;;  %v4141_v4 = vld [vmem:[%s6456_s1 + $0x368] sm:$0xf0]  ;;  %v4056_v16 = vld [vmem:[%s6456_s1 + $0xc0] sm:$0xf0] }
  0xed   :  { %2531 = vmatpush.bf16.msrb.mxu1 %v3659_v13  ;;  %v4233_v13 = vld [vmem:[%s6456_s1 + $0x64c] sm:$0xf]  ;;  %v3342_v5 = vld [vmem:[%s6456_s1 + $0x498] sm:$0xf]  ;;  %v3302_v41 = vld [vmem:[%s6456_s1 + $0x448] sm:$0xf] }
  0xee   :  { %2545 = vmatpush.bf16.msrb.mxu2 %v3819_v14  ;;  %v3556_v14 = vld [vmem:[%s6456_s1 + $0x65c] sm:$0xf0]  ;;  %v4181_v6 = vld [vmem:[%s6456_s1 + $0x4a8] sm:$0xf0]  ;;  %v4046_v52 = vld [vmem:[%s6456_s1 + $0x70] sm:$0xf0] }
  0xef   :  { %2559 = vmatpush.bf16.msrb.mxu3 %v3979_v19  ;;  %v3716_v19 = vld [vmem:[%s6456_s1 + $0x79c] sm:$0xf0]  ;;  %v3559_v30 = vor.u32 %v4233_v13, %v3556_v14  ;;  %v3183_v13 = vor.u32 %v4141_v4, %v3182_v56 }
  0xf0   :  { %2518 = vmatpush.bf16.msrb.mxu0 %v3479_v25  ;;  %v3399_v25 = vor.u32 %v4193_v8, %v3396_v9 }
  0xf1   :  { %2532 = vmatpush.bf16.msrb.mxu1 %v3639_v26  ;;  %v4111_v26 = vld [vmem:[%s6456_s1 + $0x278] sm:$0xf0] }
  0xf2   :  { %2546 = vmatpush.bf16.msrb.mxu2 %v3799_v27  ;;  %v3222_v27 = vld [vmem:[%s6456_s1 + $0x3a8] sm:$0xf]  ;;  %v2274_v9 = vpop.f32.mrf.mxu2 }
  0xf3   :  { %2560 = vmatpush.bf16.msrb.mxu3 %v3959_v31  ;;  %v3719_v31 = vor.u32 %v4273_v15, %v3716_v19  ;;  %v2288_v14 = vpop.f32.mrf.mxu3  ;;  %v2842_v15 = vld [vmem:[%s6456_s1 + $0xb0] sm:$0xf]  ;;  %v3343_v19 = vor.u32 %v4181_v6, %v3342_v5  ;;  %v2782_v6 = vld [vmem:[%s6456_s1 + $0x38] sm:$0xf] }
  0xf4   :  { %2519 = vmatpush.bf16.msrb.mxu0 %v3459_v37  ;;  %v2903_v37 = vor.u32 %v4071_v23, %v2902_v22  ;;  %v4136_v22 = vld [vmem:[%s6456_s1 + $0x340] sm:$0xf0] }
  0xf5   :  { %2533 = vmatpush.bf16.msrb.mxu1 %v3619_v38  ;;  %v3063_v38 = vor.u32 %v4111_v26, %v3062_v24  ;;  %v3322_v24 = vld [vmem:[%s6456_s1 + $0x470] sm:$0xf] }
  0xf6   :  { %2547 = vmatpush.bf16.msrb.mxu2 %v3779_v40  ;;  %v3223_v40 = vor.u32 %v4151_v28, %v3222_v27  ;;  %v2843_v27 = vor.u32 %v4056_v16, %v2842_v15  ;;  %v3262_v15 = vld [vmem:[%s6456_s1 + $0x3f8] sm:$0xf]  ;;  %v4161_v16 = vld [vmem:[%s6456_s1 + $0x408] sm:$0xf0] }
  0xf7   :  { %2561 = vmatpush.bf16.msrb.mxu3 %v3939_v48  ;;  %v3042_v48 = vld [vmem:[%s6456_s1 + $0x240] sm:$0xf] }
  0xf8   :  { %2520 = vmatpush.bf16.msrb.mxu0 %v3439_v55  ;;  %v3362_v55 = vld [vmem:[%s6456_s1 + $0x4c0] sm:$0xf]  ;;  %v3043_v53 = vor.u32 %v4106_v50, %v3042_v48 }
  0xf9   :  { %2534 = vmatpush.bf16.msrb.mxu1 %v3599_v57  ;;  %v4186_v57 = vld [vmem:[%s6456_s1 + $0x4d0] sm:$0xf0]  ;;  %v2802_v48 = vld [vmem:[%s6456_s1 + $0x60] sm:$0xf] }
  0xfa   :  { %2548 = vmatpush.bf16.msrb.mxu2 %v3759_v59  ;;  %v2273_v59 = vadd.f32 %v2272_v29, %v2259_v35  ;;  %v3363_v3 = vor.u32 %v4186_v57, %v3362_v55  ;;  %v4086_v55 = vld [vmem:[%s6456_s1 + $0x1b0] sm:$0xf0]  ;;  %v3303_v57 = vor.u32 %v4171_v42, %v3302_v41  ;;  %v4311_v41 = vld [vmem:[%s6456_s1 + $0x8b8] sm:$0xf0] }
  0xfb   :  { %2562 = vmatpush.bf16.msrb.mxu3 %v3919_v63  ;;  %v2862_v63 = vld [vmem:[%s6456_s1 + $0xd8] sm:$0xf] }
  0xfc   :  { %2521 = vmatpush.bf16.msrb.mxu0 %v3419_v7  ;;  %v2287_v7 = vadd.f32 %v2286_v34, %v2273_v59  ;;  %v2863_v8 = vor.u32 %v4061_v0, %v2862_v63  ;;  %v2982_v34 = vld [vmem:[%s6456_s1 + $0x1c8] sm:$0xf]  ;;  %v3282_v0 = vld [vmem:[%s6456_s1 + $0x420] sm:$0xf] }
  0xfd   :  { %2535 = vmatpush.bf16.msrb.mxu1 %v3579_v11  ;;  %v2261_v11 = vadd.f32 %v2260_v54, %v2247_v61  ;;  %v2962_v54 = vld [vmem:[%s6456_s1 + $0x1a0] sm:$0xf]  ;;  %v4126_v61 = vld [vmem:[%s6456_s1 + $0x2f0] sm:$0xf0] }
  0xfe   :  { %2549 = vmatpush.bf16.msrb.mxu2 %v3739_v12  ;;  %v3023_v12 = vor.u32 %v4101_v45, %v3022_v2  ;;  %v4166_v2 = vld [vmem:[%s6456_s1 + $0x430] sm:$0xf0]  ;;  %v2963_v45 = vor.u32 %v4086_v55, %v2962_v54  ;;  %v3522_v54 = vld [vmem:[%s6456_s1 + $0x600] sm:$0xf] }
  0xff   :  { %2563 = vmatpush.bf16.msrb.mxu3 %v3899_v18  ;;  %v3002_v18 = vld [vmem:[%s6456_s1 + $0x1f0] sm:$0xf]  ;;  %v2275_v29 = vadd.f32 %v2274_v9, %v2261_v11  ;;  %v3283_v9 = vor.u32 %v4166_v2, %v3282_v0  ;;  %v4002_v0 = vld [vmem:[%s6456_s1 + $0x9c0] sm:$0xf]  ;;  %v4346_v2 = vld [vmem:[%s6456_s1 + $0x9d0] sm:$0xf0] }
 0x100   :  { %2522 = vmatpush.bf16.msrb.mxu0 %v3399_v25  ;;  %v2300_v23 = vpop.f32.mrf.mxu0  ;;  %v4176_v25 = vld [vmem:[%s6456_s1 + $0x480] sm:$0xf0] }
 0x101   :  { %2536 = vmatpush.bf16.msrb.mxu1 %v3559_v30  ;;  %v2301_v26 = vadd.f32 %v2300_v23, %v2287_v7  ;;  %v2314_v28 = vpop.f32.mrf.mxu1  ;;  %v3003_v30 = vor.u32 %v4096_v20, %v3002_v18  ;;  %v3323_v35 = vor.u32 %v4176_v25, %v3322_v24  ;;  %v4041_v7 = vld [vmem:[%s6456_s1 + $0x48] sm:$0xf0]  ;;  %v4036_v20 = vld [vmem:[%s6456_s1 + $0x20] sm:$0xf0]  ;;  %v2922_v24 = vld [vmem:[%s6456_s1 + $0x150] sm:$0xf] }
 0x102   :  { %2550 = vmatpush.bf16.msrb.mxu2 %v3719_v31  ;;  %v3163_v31 = vor.u32 %v4136_v22, %v3162_v21  ;;  %v2783_v18 = vor.u32 %v4041_v7, %v2782_v6  ;;  %v4076_v25 = vld [vmem:[%s6456_s1 + $0x160] sm:$0xf0]  ;;  %v3662_v6 = vld [vmem:[%s6456_s1 + $0x718] sm:$0xf]  ;;  %v4003_v7 = vor.u32 %v4346_v2, %v4002_v0  ;;  %v4241_v0 = vld [vmem:[%s6456_s1 + $0x688] sm:$0xf0] }
 0x103   :  { %2564 = vmatpush.bf16.msrb.mxu3 %v3879_v36  ;;  %2523 = vmatmul.bf16.vlgmr.msrb.gmra.mxu0 %v4882_v39  ;;  %v4091_v36 = vld [vmem:[%s6456_s1 + $0x1d8] sm:$0xf0]  ;;  %v3742_v2 = vld [vmem:[%s6456_s1 + $0x7b8] sm:$0xf] }
 0x104   :  { %2571 = vmatpush.bf16.msra.mxu0 %v2903_v37  ;;  %2537 = vmatmul.bf16.vlgmr.msrb.gmra.mxu1 %v4895_v44  ;;  %v3142_v37 = vld [vmem:[%s6456_s1 + $0x308] sm:$0xf]  ;;  %v2983_v50 = vor.u32 %v4091_v36, %v2982_v34 }
 0x105   :  { %2585 = vmatpush.bf16.msra.mxu1 %v3063_v38  ;;  %2551 = vmatmul.bf16.vlgmr.msrb.gmra.mxu2 %v4893_v43  ;;  %v4131_v38 = vld [vmem:[%s6456_s1 + $0x318] sm:$0xf0]  ;;  %v3542_v34 = vld [vmem:[%s6456_s1 + $0x628] sm:$0xf] }
 0x106   :  { %2599 = vmatpush.bf16.msra.mxu2 %v3223_v40  ;;  %2565 = vmatmul.bf16.vlgmr.msrb.gmra.mxu3 %v4903_v47  ;;  %v2315_v40 = vadd.f32 %v2314_v28, %v2301_v26  ;;  %v3143_v51 = vor.u32 %v4131_v38, %v3142_v37  ;;  %v3082_v26 = vld [vmem:[%s6456_s1 + $0x290] sm:$0xf]  ;;  %v3702_v36 = vld [vmem:[%s6456_s1 + $0x768] sm:$0xf]  ;;  %v4271_v38 = vld [vmem:[%s6456_s1 + $0x778] sm:$0xf0] }
 0x107   :  { %2613 = vmatpush.bf16.msra.mxu3 %v3383_v49  ;;  %v2289_v49 = vadd.f32 %v2288_v14, %v2275_v29  ;;  %v4121_v14 = vld [vmem:[%s6456_s1 + $0x2c8] sm:$0xf0]  ;;  %v4116_v29 = vld [vmem:[%s6456_s1 + $0x2a0] sm:$0xf0]  ;;  %v3703_v55 = vor.u32 %v4271_v38, %v3702_v36  ;;  %v3442_v38 = vld [vmem:[%s6456_s1 + $0x560] sm:$0xf] }
 0x108   :  { %2572 = vmatpush.bf16.msra.mxu0 %v2883_v60  ;;  %v2328_v59 = vpop.f32.mrf.mxu2  ;;  %v3122_v60 = vld [vmem:[%s6456_s1 + $0x2e0] sm:$0xf] }
 0x109   :  { %2586 = vmatpush.bf16.msra.mxu1 %v3043_v53  ;;  %v2329_v53 = vadd.f32 %v2328_v59, %v2315_v40  ;;  %v2342_v63 = vpop.f32.mrf.mxu3  ;;  %v3123_v5 = vor.u32 %v4126_v61, %v3122_v60  ;;  %v2316_v11 = vpop.f32.mrf.mxu1  ;;  %v3862_v40 = vld [vmem:[%s6456_s1 + $0x8a8] sm:$0xf]  ;;  %v4226_v59 = vld [vmem:[%s6456_s1 + $0x610] sm:$0xf0]  ;;  %v3682_v60 = vld [vmem:[%s6456_s1 + $0x740] sm:$0xf] }
 0x10a   :  { %2600 = vmatpush.bf16.msra.mxu2 %v3203_v62  ;;  %v2302_v62 = vpop.f32.mrf.mxu0 }
 0x10b   :  { %2614 = vmatpush.bf16.msra.mxu3 %v3363_v3  ;;  %v2803_v3 = vor.u32 %v4046_v52, %v2802_v48  ;;  %v2303_v56 = vadd.f32 %v2302_v62, %v2289_v49  ;;  %v2343_v4 = vadd.f32 %v2342_v63, %v2329_v53  ;;  %v3083_v48 = vor.u32 %v4116_v29, %v3082_v26  ;;  %v4022_v49 = vld [vmem:[%s6456_s1 + $0x9e8] sm:$0xf]  ;;  %v4266_v53 = vld [vmem:[%s6456_s1 + $0x750] sm:$0xf0]  ;;  %v3842_v62 = vld [vmem:[%s6456_s1 + $0x880] sm:$0xf] }
 0x10c   :  { %2573 = vmatpush.bf16.msra.mxu0 %v2863_v8  ;;  %v2942_v8 = vld [vmem:[%s6456_s1 + $0x178] sm:$0xf]  ;;  %v4306_v63 = vld [vmem:[%s6456_s1 + $0x890] sm:$0xf0]  ;;  %v3462_v26 = vld [vmem:[%s6456_s1 + $0x588] sm:$0xf] }
 0x10d   :  { %2587 = vmatpush.bf16.msra.mxu1 %v3023_v12  ;;  %v4081_v12 = vld [vmem:[%s6456_s1 + $0x188] sm:$0xf0]  ;;  %2684 = vst [vmem:[#allocation2 + $0x8] sm:$0xff] %v2343_v4  ;;  %v2317_v21 = vadd.f32 %v2316_v11, %v2303_v56  ;;  %v3843_v56 = vor.u32 %v4306_v63, %v3842_v62  ;;  %v3502_v4 = vld [vmem:[%s6456_s1 + $0x5d8] sm:$0xf] }
 0x10e   :  { %2601 = vmatpush.bf16.msra.mxu2 %v3183_v13  ;;  %v3102_v13 = vld [vmem:[%s6456_s1 + $0x2b8] sm:$0xf]  ;;  %v2943_v22 = vor.u32 %v4081_v12, %v2942_v8  ;;  %v4261_v8 = vld [vmem:[%s6456_s1 + $0x728] sm:$0xf0] }
 0x10f   :  { %2615 = vmatpush.bf16.msra.mxu3 %v3343_v19  ;;  %v2762_v19 = vld [vmem:[%s6456_s1 + $0x10] sm:$0xf]  ;;  %v3103_v23 = vor.u32 %v4121_v14, %v3102_v13  ;;  %v4301_v11 = vld [vmem:[%s6456_s1 + $0x868] sm:$0xf0]  ;;  %v3982_v12 = vld [vmem:[%s6456_s1 + $0x998] sm:$0xf]  ;;  %v3663_v14 = vor.u32 %v4261_v8, %v3662_v6 }
 0x110   :  { %2574 = vmatpush.bf16.msra.mxu0 %v2843_v27  ;;  %v3263_v27 = vor.u32 %v4161_v16, %v3262_v15  ;;  %v2330_v28 = vpop.f32.mrf.mxu2  ;;  %v2763_v37 = vor.u32 %v4036_v20, %v2762_v19  ;;  %v3482_v16 = vld [vmem:[%s6456_s1 + $0x5b0] sm:$0xf]  ;;  %v4296_v20 = vld [vmem:[%s6456_s1 + $0x840] sm:$0xf0]  ;;  %v3582_v62 = vld [vmem:[%s6456_s1 + $0x678] sm:$0xf] }
 0x111   :  { %2588 = vmatpush.bf16.msra.mxu1 %v3003_v30  ;;  %v3242_v30 = vld [vmem:[%s6456_s1 + $0x3d0] sm:$0xf]  ;;  %v2331_v32 = vadd.f32 %v2330_v28, %v2317_v21  ;;  %v2344_v33 = vpop.f32.mrf.mxu3  ;;  %v3622_v28 = vld [vmem:[%s6456_s1 + $0x6c8] sm:$0xf]  ;;  %v3583_v6 = vor.u32 %v4241_v0, %v3582_v62 }
 0x112   :  { %2602 = vmatpush.bf16.msra.mxu2 %v3163_v31  ;;  %v4156_v31 = vld [vmem:[%s6456_s1 + $0x3e0] sm:$0xf0]  ;;  %v3802_v19 = vld [vmem:[%s6456_s1 + $0x830] sm:$0xf] }
 0x113   :  { %2616 = vmatpush.bf16.msra.mxu3 %v3323_v35  ;;  %v4231_v35 = vld [vmem:[%s6456_s1 + $0x638] sm:$0xf0]  ;;  %v2345_v42 = vadd.f32 %v2344_v33, %v2331_v32  ;;  %v3962_v21 = vld [vmem:[%s6456_s1 + $0x970] sm:$0xf]  ;;  %v3942_v33 = vld [vmem:[%s6456_s1 + $0x948] sm:$0xf] }
 0x114   :  { %2575 = vmatpush.bf16.msra.mxu0 %v2823_v46  ;;  %v2923_v46 = vor.u32 %v4076_v25, %v2922_v24  ;;  %v3543_v52 = vor.u32 %v4231_v35, %v3542_v34  ;;  %v3803_v25 = vor.u32 %v4296_v20, %v3802_v19  ;;  %v4291_v32 = vld [vmem:[%s6456_s1 + $0x818] sm:$0xf0]  ;;  %v3402_v8 = vld [vmem:[%s6456_s1 + $0x510] sm:$0xf] }
 0x115   :  { %2589 = vmatpush.bf16.msra.mxu1 %v2983_v50  ;;  %v4351_v50 = vld [vmem:[%s6456_s1 + $0x9f8] sm:$0xf0]  ;;  %2690 = vst [vmem:[#allocation2 + $0x30] sm:$0xff] %v2345_v42 }
 0x116   :  { %2603 = vmatpush.bf16.msra.mxu2 %v3143_v51  ;;  %v3243_v51 = vor.u32 %v4156_v31, %v3242_v30  ;;  %v4023_v61 = vor.u32 %v4351_v50, %v4022_v49  ;;  %v4251_v30 = vld [vmem:[%s6456_s1 + $0x6d8] sm:$0xf0]  ;;  %v3782_v31 = vld [vmem:[%s6456_s1 + $0x808] sm:$0xf]  ;;  %v4286_v49 = vld [vmem:[%s6456_s1 + $0x7f0] sm:$0xf0] }
 0x117   :  { %2617 = vmatpush.bf16.msra.mxu3 %v3303_v57  ;;  %v3863_v57 = vor.u32 %v4311_v41, %v3862_v40  ;;  %v4331_v34 = vld [vmem:[%s6456_s1 + $0x958] sm:$0xf0]  ;;  %v3623_v36 = vor.u32 %v4251_v30, %v3622_v28  ;;  %v4206_v40 = vld [vmem:[%s6456_s1 + $0x570] sm:$0xf0]  ;;  %v3602_v41 = vld [vmem:[%s6456_s1 + $0x6a0] sm:$0xf] }
 0x118   :  { %2576 = vmatpush.bf16.msra.mxu0 %v2803_v3  ;;  %v3523_v3 = vor.u32 %v4226_v59, %v3522_v54  ;;  %v3943_v42 = vor.u32 %v4331_v34, %v3942_v33  ;;  %v3922_v50 = vld [vmem:[%s6456_s1 + $0x920] sm:$0xf] }
 0x119   :  { %2590 = vmatpush.bf16.msra.mxu1 %v2963_v45  ;;  %v3683_v45 = vor.u32 %v4266_v53, %v3682_v60  ;;  %v6395_v54 = vld [vmem:[%s6457_s2] sm:$0x1f]  ;;  %v4201_v53 = vld [vmem:[%s6456_s1 + $0x548] sm:$0xf0]  ;;  %s2700_s2 = sshll.u32 %s6458_s3, 4  ;;  %s2701_s2 = int_to_ptr.hbm [resolvable:$true] %s2700_s2 }
 0x11a   :  { %2604 = vmatpush.bf16.msra.mxu2 %v3123_v5  ;;  %v4221_v5 = vld [vmem:[%s6456_s1 + $0x5e8] sm:$0xf0] }
 0x11b   :  { %2618 = vmatpush.bf16.msra.mxu3 %v3283_v9  ;;  %v3822_v9 = vld [vmem:[%s6456_s1 + $0x858] sm:$0xf]  ;;  %v3503_v13 = vor.u32 %v4221_v5, %v3502_v4  ;;  %v4321_v4 = vld [vmem:[%s6456_s1 + $0x908] sm:$0xf0] }
 0x11c   :  { %2577 = vmatpush.bf16.msra.mxu0 %v2783_v18  ;;  %v3823_v15 = vor.u32 %v4301_v11, %v3822_v9  ;;  %v4216_v18 = vld [vmem:[%s6456_s1 + $0x5c0] sm:$0xf0]  ;;  %v3562_v11 = vld [vmem:[%s6456_s1 + $0x650] sm:$0xf] }
 0x11d   :  { %2591 = vmatpush.bf16.msra.mxu1 %v2943_v22  ;;  %v4336_v22 = vld [vmem:[%s6456_s1 + $0x980] sm:$0xf0] }
 0x11e   :  { %2605 = vmatpush.bf16.msra.mxu2 %v3103_v23  ;;  %v3483_v23 = vor.u32 %v4216_v18, %v3482_v16  ;;  %v3963_v29 = vor.u32 %v4336_v22, %v3962_v21  ;;  %v4196_v9 = vld [vmem:[%s6456_s1 + $0x520] sm:$0xf0]  ;;  %v3882_v16 = vld [vmem:[%s6456_s1 + $0x8d0] sm:$0xf] }
 0x11f   :  { %2619 = vmatpush.bf16.msra.mxu3 %v3263_v27  ;;  %v4211_v27 = vld [vmem:[%s6456_s1 + $0x598] sm:$0xf0]  ;;  %v4316_v18 = vld [vmem:[%s6456_s1 + $0x8e0] sm:$0xf0] }
 0x120   :  { %2578 = vmatpush.bf16.msra.mxu0 %v2763_v37  ;;  %v3463_v35 = vor.u32 %v4211_v27, %v3462_v26  ;;  %v3783_v37 = vor.u32 %v4291_v32, %v3782_v31  ;;  %v2356_v60 = vpop.f32.mrf.mxu0  ;;  %v3883_v22 = vor.u32 %v4316_v18, %v3882_v16 }
 0x121   :  { %2592 = vmatpush.bf16.msra.mxu1 %v2923_v46  ;;  %v4246_v46 = vld [vmem:[%s6456_s1 + $0x6b0] sm:$0xf0] }
 0x122   :  { %2606 = vmatpush.bf16.msra.mxu2 %v3083_v48  ;;  %v3762_v48 = vld [vmem:[%s6456_s1 + $0x7e0] sm:$0xf] }
 0x123   :  { %2620 = vmatpush.bf16.msra.mxu3 %v3243_v51  ;;  %2579 = vmatmul.bf16.vlgmr.msra.gmra.mxu0 %v4660_v58  ;;  %v3642_v58 = vld [vmem:[%s6456_s1 + $0x6f0] sm:$0xf]  ;;  %v4326_v51 = vld [vmem:[%s6456_s1 + $0x930] sm:$0xf0]  ;;  %v3763_v59 = vor.u32 %v4286_v49, %v3762_v48 }
 0x124   :  { %2627 = vmatpush.bf16.msrb.mxu0 %v3543_v52  ;;  %2593 = vmatmul.bf16.vlgmr.msra.gmra.mxu1 %v4696_v10  ;;  %v4256_v10 = vld [vmem:[%s6456_s1 + $0x700] sm:$0xf0]  ;;  %v3443_v52 = vor.u32 %v4206_v40, %v3442_v38  ;;  %v3923_v63 = vor.u32 %v4326_v51, %v3922_v50  ;;  %v412_v51 = vperm.slane %v6395_v54, 3 }
 0x125   :  { %2641 = vmatpush.bf16.msrb.mxu1 %v3703_v55  ;;  %2607 = vmatmul.bf16.vlgmr.msra.gmra.mxu2 %v4674_v1  ;;  %v4341_v1 = vld [vmem:[%s6456_s1 + $0x9a8] sm:$0xf0]  ;;  %v3643_v24 = vor.u32 %v4256_v10, %v3642_v58  ;;  %v411_v55 = vperm.slane %v6395_v54, 2  ;;  %v3403_v58 = vor.u32 %v4196_v9, %v3402_v8 }
 0x126   :  { %2655 = vmatpush.bf16.msrb.mxu2 %v3863_v57  ;;  %2621 = vmatmul.bf16.vlgmr.msra.gmra.mxu3 %v4710_v17  ;;  %v3983_v17 = vor.u32 %v4341_v1, %v3982_v12  ;;  %v3603_v57 = vor.u32 %v4246_v46, %v3602_v41 }
 0x127   :  { %2669 = vmatpush.bf16.msrb.mxu3 %v4023_v61  ;;  %v3422_v61 = vld [vmem:[%s6456_s1 + $0x538] sm:$0xf]  ;;  %v2357_v12 = vadd.f32 %v2356_v60, %v411_v55 }
 0x128   :  { %2628 = vmatpush.bf16.msrb.mxu0 %v3523_v3  ;;  %v4281_v3 = vld [vmem:[%s6456_s1 + $0x7c8] sm:$0xf0]  ;;  %v3423_v5 = vor.u32 %v4201_v53, %v3422_v61 }
 0x129   :  { %2642 = vmatpush.bf16.msrb.mxu1 %v3683_v45  ;;  %v2370_v45 = vpop.f32.mrf.mxu1  ;;  %v2398_v20 = vpop.f32.mrf.mxu3 }
 0x12a   :  { %2656 = vmatpush.bf16.msrb.mxu2 %v3843_v56  ;;  %v3902_v56 = vld [vmem:[%s6456_s1 + $0x8f8] sm:$0xf]  ;;  %v2371_v21 = vadd.f32 %v2370_v45, %v2357_v12 }
 0x12b   :  { %2670 = vmatpush.bf16.msrb.mxu3 %v4003_v7  ;;  %v3743_v7 = vor.u32 %v4281_v3, %v3742_v2  ;;  %v3903_v1 = vor.u32 %v4321_v4, %v3902_v56 }
 0x12c   :  { %2629 = vmatpush.bf16.msrb.mxu0 %v3503_v13  ;;  %v4236_v13 = vld [vmem:[%s6456_s1 + $0x660] sm:$0xf0] }
 0x12d   :  { %2643 = vmatpush.bf16.msrb.mxu1 %v3663_v14  ;;  %v3722_v14 = vld [vmem:[%s6456_s1 + $0x790] sm:$0xf]  ;;  %v3563_v10 = vor.u32 %v4236_v13, %v3562_v11 }
 0x12e   :  { %2657 = vmatpush.bf16.msrb.mxu2 %v3823_v15  ;;  %v4276_v15 = vld [vmem:[%s6456_s1 + $0x7a0] sm:$0xf0]  ;;  %s4382_s1 = smov [#allocation2]  }
 0x12f   :  { %2671 = vmatpush.bf16.msrb.mxu3 %v3983_v17  ;;  %v2384_v17 = vpop.f32.mrf.mxu2  ;;  %v3723_v19 = vor.u32 %v4276_v15, %v3722_v14  ;;  %s2698_s22 = sshll.u32 %s4382_s1, 4  ;;  %s2699_s22 = int_to_ptr.vmem [resolvable:$true] %s2698_s22 }
 0x130   :  { %2630 = vmatpush.bf16.msrb.mxu0 %v3483_v23  ;;  %v2358_v23 = vpop.f32.mrf.mxu0 }
 0x131   :  { %2644 = vmatpush.bf16.msrb.mxu1 %v3643_v24  ;;  %v2372_v24 = vpop.f32.mrf.mxu1  ;;  %v2359_v26 = vadd.f32 %v2358_v23, %v411_v55  ;;  %v2400_v30 = vpop.f32.mrf.mxu3 }
 0x132   :  { %2658 = vmatpush.bf16.msrb.mxu2 %v3803_v25  ;;  %v2385_v25 = vadd.f32 %v2384_v17, %v2371_v21 }
 0x133   :  { %2672 = vmatpush.bf16.msrb.mxu3 %v3963_v29  ;;  %v2373_v29 = vadd.f32 %v2372_v24, %v2359_v26 }
 0x134   :  { %2631 = vmatpush.bf16.msrb.mxu0 %v3463_v35  ;;  %v2399_v27 = vadd.f32 %v2398_v20, %v2385_v25  ;;  %v413_v20 = vperm.slane %v6395_v54, 4 }
 0x135   :  { %2645 = vmatpush.bf16.msrb.mxu1 %v3623_v36 }
 0x136   :  { %2659 = vmatpush.bf16.msrb.mxu2 %v3783_v37 }
 0x137   :  { %2673 = vmatpush.bf16.msrb.mxu3 %v3943_v42  ;;  %v2386_v28 = vpop.f32.mrf.mxu2 }
 0x138   :  { %2632 = vmatpush.bf16.msrb.mxu0 %v3443_v52  ;;  %v2387_v34 = vadd.f32 %v2386_v28, %v2373_v29 }
 0x139   :  { %2646 = vmatpush.bf16.msrb.mxu1 %v3603_v57 }
 0x13a   :  { %2660 = vmatpush.bf16.msrb.mxu2 %v3763_v59  ;;  %v2401_v36 = vadd.f32 %v2400_v30, %v2387_v34 }
 0x13b   :  { %2674 = vmatpush.bf16.msrb.mxu3 %v3923_v63 }
 0x13c   :  { %2633 = vmatpush.bf16.msrb.mxu0 %v3423_v5 }
 0x13d   :  { %2647 = vmatpush.bf16.msrb.mxu1 %v3583_v6 }
 0x13e   :  { %2661 = vmatpush.bf16.msrb.mxu2 %v3743_v7 }
 0x13f   :  { %2675 = vmatpush.bf16.msrb.mxu3 %v3903_v1 }
 0x140   :  { %2634 = vmatpush.bf16.msrb.mxu0 %v3403_v58  ;;  %v2412_v31 = vpop.f32.mrf.mxu0 }
 0x141   :  { %2648 = vmatpush.bf16.msrb.mxu1 %v3563_v10  ;;  %v2413_v32 = vadd.f32 %v2412_v31, %v2399_v27  ;;  %v2426_v33 = vpop.f32.mrf.mxu1 }
 0x142   :  { %2662 = vmatpush.bf16.msrb.mxu2 %v3723_v19 }
 0x143   :  { %2676 = vmatpush.bf16.msrb.mxu3 %v3883_v22  ;;  %2635 = vmatmul.bf16.vlgmr.msrb.gmra.mxu0 %v4882_v39  ;;  %v2427_v35 = vadd.f32 %v2426_v33, %v2413_v32 }
 0x144   :  { %2649 = vmatmul.bf16.vlgmr.msrb.gmra.mxu1 %v4895_v44 }
 0x145   :  { %2663 = vmatmul.bf16.vlgmr.msrb.gmra.mxu2 %v4893_v43 }
 0x146   :  { %2677 = vmatmul.bf16.vlgmr.msrb.gmra.mxu3 %v4903_v47 }
 0x148   :  { %v2440_v37 = vpop.f32.mrf.mxu2  ;;  %v2414_v39 = vpop.f32.mrf.mxu0 }
 0x149   :  { %v2441_v38 = vadd.f32 %v2440_v37, %v2427_v35  ;;  %v2454_v40 = vpop.f32.mrf.mxu3  ;;  %v2415_v41 = vadd.f32 %v2414_v39, %v2401_v36  ;;  %v2428_v42 = vpop.f32.mrf.mxu1 }
 0x14b   :  { %v2455_v44 = vadd.f32 %v2454_v40, %v2441_v38  ;;  %v2429_v43 = vadd.f32 %v2428_v42, %v2415_v41 }
 0x14d   :  { %2685 = vst [vmem:[#allocation2 + $0x10] sm:$0xff] %v2455_v44 }
 0x150   :  { %v2442_v47 = vpop.f32.mrf.mxu2 }
 0x151   :  { %v2443_v46 = vadd.f32 %v2442_v47, %v2429_v43  ;;  %v2456_v48 = vpop.f32.mrf.mxu3 }
 0x153   :  { %v2457_v49 = vadd.f32 %v2456_v48, %v2443_v46 }
 0x155   :  { %2691 = vst [vmem:[#allocation2 + $0x38] sm:$0xff] %v2457_v49 }
 0x160   :  { %v2468_v50 = vpop.f32.mrf.mxu0 }
 0x161   :  { %v2482_v52 = vpop.f32.mrf.mxu1  ;;  %v2469_v55 = vadd.f32 %v2468_v50, %v412_v51 }
 0x163   :  { %v2483_v60 = vadd.f32 %v2482_v52, %v2469_v55 }
 0x168   :  { %v2496_v57 = vpop.f32.mrf.mxu2  ;;  %v2470_v61 = vpop.f32.mrf.mxu0 }
 0x169   :  { %v2510_v59 = vpop.f32.mrf.mxu3  ;;  %v2484_v53 = vpop.f32.mrf.mxu1  ;;  %v2497_v62 = vadd.f32 %v2496_v57, %v2483_v60  ;;  %v2471_v63 = vadd.f32 %v2470_v61, %v412_v51 }
 0x16b   :  { %v2511_v0 = vadd.f32 %v2510_v59, %v2497_v62  ;;  %v2485_v3 = vadd.f32 %v2484_v53, %v2471_v63 }
 0x170   :  { %v2498_v2 = vpop.f32.mrf.mxu2 }
 0x171   :  { %v2512_v45 = vpop.f32.mrf.mxu3  ;;  %v2499_v6 = vadd.f32 %v2498_v2, %v2485_v3 }
 0x173   :  { %v2513_v8 = vadd.f32 %v2512_v45, %v2499_v6 }
 0x180   :  { %v2524_v56 = vpop.f32.mrf.mxu0 }
 0x181   :  { %v2525_v4 = vadd.f32 %v2524_v56, %v2511_v0  ;;  %v2538_v5 = vpop.f32.mrf.mxu1 }
 0x183   :  { %v2539_v7 = vadd.f32 %v2538_v5, %v2525_v4 }
 0x188   :  { %v2552_v9 = vpop.f32.mrf.mxu2  ;;  %v2526_v12 = vpop.f32.mrf.mxu0 }
 0x189   :  { %v2553_v11 = vadd.f32 %v2552_v9, %v2539_v7  ;;  %v2566_v1 = vpop.f32.mrf.mxu3  ;;  %v2527_v13 = vadd.f32 %v2526_v12, %v2513_v8  ;;  %v2540_v15 = vpop.f32.mrf.mxu1 }
 0x18b   :  { %v2567_v14 = vadd.f32 %v2566_v1, %v2553_v11  ;;  %v2541_v16 = vadd.f32 %v2540_v15, %v2527_v13 }
 0x18d   :  { %2686 = vst [vmem:[#allocation2 + $0x18] sm:$0xff] %v2567_v14 }
 0x190   :  { %v2554_v18 = vpop.f32.mrf.mxu2 }
 0x191   :  { %v2555_v58 = vadd.f32 %v2554_v18, %v2541_v16  ;;  %v2568_v17 = vpop.f32.mrf.mxu3 }
 0x193   :  { %v2569_v10 = vadd.f32 %v2568_v17, %v2555_v58 }
 0x195   :  { %2692 = vst [vmem:[#allocation2 + $0x40] sm:$0xff] %v2569_v10 }
 0x1a0   :  { %v2580_v19 = vpop.f32.mrf.mxu0 }
 0x1a1   :  { %v2594_v21 = vpop.f32.mrf.mxu1  ;;  %v2581_v22 = vadd.f32 %v2580_v19, %v413_v20 }
 0x1a3   :  { %v2595_v25 = vadd.f32 %v2594_v21, %v2581_v22 }
 0x1a8   :  { %v2608_v23 = vpop.f32.mrf.mxu2  ;;  %v2582_v26 = vpop.f32.mrf.mxu0 }
 0x1a9   :  { %v2622_v24 = vpop.f32.mrf.mxu3  ;;  %v2596_v27 = vpop.f32.mrf.mxu1  ;;  %v2609_v28 = vadd.f32 %v2608_v23, %v2595_v25  ;;  %v2583_v29 = vadd.f32 %v2582_v26, %v413_v20 }
 0x1ab   :  { %v2623_v31 = vadd.f32 %v2622_v24, %v2609_v28  ;;  %v2597_v32 = vadd.f32 %v2596_v27, %v2583_v29 }
 0x1b0   :  { %v2610_v30 = vpop.f32.mrf.mxu2 }
 0x1b1   :  { %v2624_v33 = vpop.f32.mrf.mxu3  ;;  %v2611_v37 = vadd.f32 %v2610_v30, %v2597_v32 }
 0x1b3   :  { %v2625_v54 = vadd.f32 %v2624_v33, %v2611_v37 }
 0x1c0   :  { %v2636_v34 = vpop.f32.mrf.mxu0 }
 0x1c1   :  { %v2637_v35 = vadd.f32 %v2636_v34, %v2623_v31  ;;  %v2650_v36 = vpop.f32.mrf.mxu1 }
 0x1c3   :  { %v2651_v38 = vadd.f32 %v2650_v36, %v2637_v35 }
 0x1c8   :  { %v2664_v39 = vpop.f32.mrf.mxu2  ;;  %v2638_v44 = vpop.f32.mrf.mxu0 }
 0x1c9   :  { %v2665_v40 = vadd.f32 %v2664_v39, %v2651_v38  ;;  %v2678_v41 = vpop.f32.mrf.mxu3  ;;  %v2639_v43 = vadd.f32 %v2638_v44, %v2625_v54  ;;  %v2652_v47 = vpop.f32.mrf.mxu1 }
 0x1cb   :  { %v2679_v42 = vadd.f32 %v2678_v41, %v2665_v40  ;;  %v2653_v46 = vadd.f32 %v2652_v47, %v2639_v43 }
 0x1cd   :  { %2688 = vst.msk [vmem:[#allocation2 + $0x20] sm:$0xff] %vm2687_vm0, %v2679_v42 }
 0x1d0   :  { %v2666_v48 = vpop.f32.mrf.mxu2 }
 0x1d1   :  { %v2667_v49 = vadd.f32 %v2666_v48, %v2653_v46  ;;  %v2680_v50 = vpop.f32.mrf.mxu3 }
 0x1d3   :  { %v2681_v51 = vadd.f32 %v2680_v50, %v2667_v49 }
 0x1d5   :  { %2693 = vst.msk [vmem:[#allocation2 + $0x48] sm:$0xff] %vm2687_vm0, %v2681_v51 }
 0x1d6   :  { %2706 = dma.vmem_to_hbm [thread:$0]  %s2699_s22, 1280, %s2701_s2, [#allocation3], %s4383_s25, %s4383_s25, %s4384_s0  }
 0x1d7   :  { %4380 = dma.done.wait [#allocation3], 1280  }
 0x1d8   :  { %4381 = vsyncadd [#allocation3], 4294966016 }
 0x1d9   :  { %2711 = vsyncpa [#allocation3], 1 }

</bundles_post_ra>
